<compile_context>
chip_gen: v7x
topology: tpu7x:2x2x1
jax: 0.10.0
libtpu: 0.0.40
codegen_flags: <defaults>
</compile_context>

<pallas_src>
import jax
import jax.numpy as jnp
from jax.experimental import pallas as pl
from jax.experimental.pallas import tpu as pltpu

LANE = 128      # lane width (last dim)
SUBLANE = 8     # f32 sublane height (second-to-last dim)


def _round_up(x, m):
    return ((x + m - 1) // m) * m


# ----------------------------- Pallas kernel -------------------------------- #
def gru_fc_kernel(x_ref, w_ih_ref, w_hh_ref, b_ih_ref, b_hh_ref,
                  fc_w_ref, fc_b_ref, out_ref):
    """Whole GRU + FC head in one invocation.

    x_ref:    (T, Bp, E)   time-major embedded tokens
    w_ih_ref: (E, 3*Hp)    fused input->hidden weights, gates (r,z,n)
    w_hh_ref: (Hp, 3*Hp)   fused hidden->hidden weights
    b_*_ref:  (1, 3*Hp)
    fc_*_ref: (Hp, Cp) / (1, Cp)
    out_ref:  (Bp, Cp)     padded logits
    """
    seq_len = x_ref.shape[0]
    bp = x_ref.shape[1]
    hp = w_hh_ref.shape[0]

    # Hoist weight / bias loads out of the recurrence loop.
    w_ih = w_ih_ref[...]
    w_hh = w_hh_ref[...]
    b_ih = b_ih_ref[...]
    b_hh = b_hh_ref[...]

    def step(t, h):
        x_t = x_ref[t]                                               # (Bp, E)
        gi = jnp.dot(x_t, w_ih, preferred_element_type=jnp.float32) + b_ih
        gh = jnp.dot(h, w_hh, preferred_element_type=jnp.float32) + b_hh
        r = jax.nn.sigmoid(gi[:, 0 * hp:1 * hp] + gh[:, 0 * hp:1 * hp])
        z = jax.nn.sigmoid(gi[:, 1 * hp:2 * hp] + gh[:, 1 * hp:2 * hp])
        n = jnp.tanh(gi[:, 2 * hp:3 * hp] + r * gh[:, 2 * hp:3 * hp])
        return (1.0 - z) * n + z * h

    h0 = jnp.zeros((bp, hp), jnp.float32)
    h_final = jax.lax.fori_loop(0, seq_len, step, h0, unroll=True)

    out_ref[...] = (jnp.dot(h_final, fc_w_ref[...],
                            preferred_element_type=jnp.float32)
                    + fc_b_ref[...])


# ----------------------------- param packing -------------------------------- #
def pack_params(params):
    """Repack PyTorch-layout GRU/FC params into the fused, lane-padded layout.

    Each gate block is placed at a 128-aligned lane offset with zero padding,
    which guarantees the padded hidden lanes stay exactly zero through the
    recurrence (sigmoid(0)=0.5 gates applied to a zero state keep it zero)."""
    w_ih, w_hh = params["w_ih"], params["w_hh"]          # (3,E,H), (3,H,H)
    b_ih, b_hh = params["b_ih"], params["b_hh"]          # (3,1,H)
    fc_w, fc_b = params["fc_w"], params["fc_b"]          # (H,C), (1,C)

    E, H = w_ih.shape[1], w_ih.shape[2]
    C = fc_w.shape[1]
    Hp = _round_up(H, LANE)
    Cp = _round_up(C, LANE)

    w_ih_p = jnp.zeros((E, 3 * Hp), jnp.float32)
    w_hh_p = jnp.zeros((Hp, 3 * Hp), jnp.float32)
    b_ih_p = jnp.zeros((1, 3 * Hp), jnp.float32)
    b_hh_p = jnp.zeros((1, 3 * Hp), jnp.float32)
    for g in range(3):
        col = g * Hp
        w_ih_p = w_ih_p.at[:, col:col + H].set(w_ih[g])
        w_hh_p = w_hh_p.at[:H, col:col + H].set(w_hh[g])
        b_ih_p = b_ih_p.at[:, col:col + H].set(b_ih[g])
        b_hh_p = b_hh_p.at[:, col:col + H].set(b_hh[g])

    fc_w_p = jnp.zeros((Hp, Cp), jnp.float32).at[:H, :C].set(fc_w)
    fc_b_p = jnp.zeros((1, Cp), jnp.float32).at[:, :C].set(fc_b)

    return dict(embedding=params["embedding"],
                w_ih=w_ih_p, w_hh=w_hh_p, b_ih=b_ih_p, b_hh=b_hh_p,
                fc_w=fc_w_p, fc_b=fc_b_p)


# ------------------------------- forward ------------------------------------ #
def intent_classifier_forward(tokens, packed, num_classes):
    """tokens: [B, T] int32.  Returns logits [B, num_classes] float32."""
    emb = packed["embedding"]                            # (V, E)
    w_ih, w_hh = packed["w_ih"], packed["w_hh"]          # (E,3Hp), (Hp,3Hp)
    b_ih, b_hh = packed["b_ih"], packed["b_hh"]          # (1,3Hp)
    fc_w, fc_b = packed["fc_w"], packed["fc_b"]          # (Hp,Cp), (1,Cp)

    B, T = tokens.shape
    E = emb.shape[1]
    Hp = w_hh.shape[0]
    Cp = fc_w.shape[1]
    Bp = _round_up(max(B, SUBLANE), SUBLANE)

    # Embedding lookup (gather) stays in plain JAX glue.
    # TODO(synk): fuse the gather in-kernel (scalar-prefetched token ids +
    #             pl.Element row gather) once T*B is large enough to matter.
    x = jnp.take(emb, tokens, axis=0)                    # (B, T, E)
    x = jnp.transpose(x, (1, 0, 2))                      # (T, B, E) time-major
    if Bp > B:
        x = jnp.pad(x, ((0, 0), (0, Bp - B), (0, 0)))    # sublane-dense batch

    flops = 2 * T * Bp * (E + Hp) * 3 * Hp + 2 * Bp * Hp * Cp
    transcendentals = T * Bp * 3 * Hp
    bytes_accessed = 4 * (x.size + w_ih.size + w_hh.size + b_ih.size
                          + b_hh.size + fc_w.size + fc_b.size + Bp * Cp)

    vmem = pl.BlockSpec(memory_space=pltpu.MemorySpace.VMEM)
    out = pl.pallas_call(
        gru_fc_kernel,
        out_shape=jax.ShapeDtypeStruct((Bp, Cp), jnp.float32),
        in_specs=[vmem] * 7,
        out_specs=vmem,
        cost_estimate=pl.CostEstimate(flops=flops,
                                      transcendentals=transcendentals,
                                      bytes_accessed=bytes_accessed),
    )(x, w_ih, w_hh, b_ih, b_hh, fc_w, fc_b)

    return out[:B, :num_classes]


# ----------------------------- reference (plain JAX) ------------------------ #
def reference_forward(tokens, params):
    emb = params["embedding"]
    w_ih, w_hh = params["w_ih"], params["w_hh"]
    b_ih, b_hh = params["b_ih"], params["b_hh"]
    fc_w, fc_b = params["fc_w"], params["fc_b"]

    x = jnp.take(emb, tokens, axis=0)                    # (B, T, E)
    B = x.shape[0]
    H = w_hh.shape[-1]
    h = jnp.zeros((B, H), jnp.float32)

    def step(h, x_t):
        gi_r = x_t @ w_ih[0] + b_ih[0]
        gi_z = x_t @ w_ih[1] + b_ih[1]
        gi_n = x_t @ w_ih[2] + b_ih[2]
        gh_r = h @ w_hh[0] + b_hh[0]
        gh_z = h @ w_hh[1] + b_hh[1]
        gh_n = h @ w_hh[2] + b_hh[2]
        r = jax.nn.sigmoid(gi_r + gh_r)
        z = jax.nn.sigmoid(gi_z + gh_z)
        n = jnp.tanh(gi_n + r * gh_n)
        h_new = (1.0 - z) * n + z * h
        return h_new, None

    h_final, _ = jax.lax.scan(step, h, jnp.transpose(x, (1, 0, 2)))
    return h_final @ fc_w + fc_b


# ----------------------------- parameter init ------------------------------- #
def init_params(key, vocab_size, embed_dim, hidden_dim, num_classes):
    ks = jax.random.split(key, 8)
    scale = 1.0 / jnp.sqrt(hidden_dim)
    embedding = jax.random.normal(ks[0], (vocab_size, embed_dim), jnp.float32)
    embedding = embedding.at[0].set(0.0)                 # padding_idx=0
    w_ih = jax.random.uniform(ks[1], (3, embed_dim, hidden_dim), jnp.float32,
                              -scale, scale)
    w_hh = jax.random.uniform(ks[2], (3, hidden_dim, hidden_dim), jnp.float32,
                              -scale, scale)
    b_ih = jax.random.uniform(ks[3], (3, 1, hidden_dim), jnp.float32, -scale, scale)
    b_hh = jax.random.uniform(ks[4], (3, 1, hidden_dim), jnp.float32, -scale, scale)
    fc_scale = 1.0 / jnp.sqrt(hidden_dim)
    fc_w = jax.random.uniform(ks[5], (hidden_dim, num_classes), jnp.float32,
                              -fc_scale, fc_scale)
    fc_b = jax.random.uniform(ks[6], (1, num_classes), jnp.float32,
                              -fc_scale, fc_scale)
    return dict(embedding=embedding, w_ih=w_ih, w_hh=w_hh,
                b_ih=b_ih, b_hh=b_hh, fc_w=fc_w, fc_b=fc_b)


# ------------------------------------ main ----------------------------------- #
if __name__ == "__main__":
    VOCAB, EMBED, HIDDEN, CLASSES = 50, 16, 32, 5
    B, T = 2, 8

    key = jax.random.PRNGKey(0)
    k_param, k_tok = jax.random.split(key)
    params = init_params(k_param, VOCAB, EMBED, HIDDEN, CLASSES)
    tokens = jax.random.randint(k_tok, (B, T), 0, VOCAB, dtype=jnp.int32)

    packed = pack_params(params)
    logits = intent_classifier_forward(tokens, packed, CLASSES)
    logits = jax.block_until_ready(logits)

    ref = jax.block_until_ready(reference_forward(tokens, params))
    assert logits.shape == (B, CLASSES)
    assert jnp.allclose(logits, ref, atol=2e-4, rtol=2e-4), (logits, ref)

    print("KERNEL_OK")
</pallas_src>

<mosaic_0001>
module attributes {stable_mosaic.version = 11 : i64} {
  func.func @gru_fc_kernel(%arg0: memref<8x8x16xf32, #tpu.memory_space<vmem>>, %arg1: memref<16x384xf32, #tpu.memory_space<vmem>>, %arg2: memref<128x384xf32, #tpu.memory_space<vmem>>, %arg3: memref<1x384xf32, #tpu.memory_space<vmem>>, %arg4: memref<1x384xf32, #tpu.memory_space<vmem>>, %arg5: memref<128x128xf32, #tpu.memory_space<vmem>>, %arg6: memref<1x128xf32, #tpu.memory_space<vmem>>, %arg7: memref<8x128xf32, #tpu.memory_space<vmem>>) attributes {dimension_semantics = [], scalar_prefetch = 0 : i64, scratch_operands = 0 : i64, tpu.core_type = #tpu.core_type<tc>} {
    %c0 = arith.constant 0 : index
    %c0_0 = arith.constant 0 : index
    %0 = vector.load %arg1[%c0, %c0_0] : memref<16x384xf32, #tpu.memory_space<vmem>>, vector<16x384xf32>
    %c0_1 = arith.constant 0 : index
    %c0_2 = arith.constant 0 : index
    %1 = vector.load %arg2[%c0_1, %c0_2] : memref<128x384xf32, #tpu.memory_space<vmem>>, vector<128x384xf32>
    %c0_3 = arith.constant 0 : index
    %c0_4 = arith.constant 0 : index
    %2 = vector.load %arg3[%c0_3, %c0_4] : memref<1x384xf32, #tpu.memory_space<vmem>>, vector<1x384xf32>
    %c0_5 = arith.constant 0 : index
    %c0_6 = arith.constant 0 : index
    %3 = vector.load %arg4[%c0_5, %c0_6] : memref<1x384xf32, #tpu.memory_space<vmem>>, vector<1x384xf32>
    %cst = arith.constant 0.000000e+00 : f32
    %4 = vector.broadcast %cst : f32 to vector<8x128xf32>
    %c0_i32 = arith.constant 0 : i32
    %5 = arith.index_cast %c0_i32 : i32 to index
    %c0_7 = arith.constant 0 : index
    %c0_8 = arith.constant 0 : index
    %6 = vector.load %arg0[%5, %c0_7, %c0_8] : memref<8x8x16xf32, #tpu.memory_space<vmem>>, vector<1x8x16xf32>
    %7 = vector.shape_cast %6 : vector<1x8x16xf32> to vector<8x16xf32>
    %cst_9 = arith.constant dense<0.000000e+00> : vector<8x384xf32>
    %8 = tpu.matmul %7, %0, %cst_9 {dimension_numbers = #tpu.dot_dimension_numbers<[1], [0], [0], [1], [0, 0, 1, 1], [], []>} : vector<8x16xf32>, vector<16x384xf32>, vector<8x384xf32> -> vector<8x384xf32>
    %9 = vector.broadcast %2 : vector<1x384xf32> to vector<8x384xf32>
    %10 = arith.addf %8, %9 : vector<8x384xf32>
    %cst_10 = arith.constant dense<0.000000e+00> : vector<8x384xf32>
    %11 = tpu.matmul %4, %1, %cst_10 {dimension_numbers = #tpu.dot_dimension_numbers<[1], [0], [0], [1], [0, 0, 1, 1], [], []>} : vector<8x128xf32>, vector<128x384xf32>, vector<8x384xf32> -> vector<8x384xf32>
    %12 = vector.broadcast %3 : vector<1x384xf32> to vector<8x384xf32>
    %13 = arith.addf %11, %12 : vector<8x384xf32>
    %14 = vector.extract_strided_slice %10 {offsets = [0, 0], sizes = [8, 128], strides = [1, 1]} : vector<8x384xf32> to vector<8x128xf32>
    %15 = vector.extract_strided_slice %13 {offsets = [0, 0], sizes = [8, 128], strides = [1, 1]} : vector<8x384xf32> to vector<8x128xf32>
    %16 = arith.addf %14, %15 : vector<8x128xf32>
    %17 = arith.negf %16 : vector<8x128xf32>
    %18 = math.exp %17 : vector<8x128xf32>
    %cst_11 = arith.constant 1.000000e+00 : f32
    %19 = vector.broadcast %cst_11 : f32 to vector<8x128xf32>
    %20 = arith.addf %19, %18 : vector<8x128xf32>
    %21 = arith.divf %19, %20 : vector<8x128xf32>
    %22 = vector.extract_strided_slice %10 {offsets = [0, 128], sizes = [8, 128], strides = [1, 1]} : vector<8x384xf32> to vector<8x128xf32>
    %23 = vector.extract_strided_slice %13 {offsets = [0, 128], sizes = [8, 128], strides = [1, 1]} : vector<8x384xf32> to vector<8x128xf32>
    %24 = arith.addf %22, %23 : vector<8x128xf32>
    %25 = arith.negf %24 : vector<8x128xf32>
    %26 = math.exp %25 : vector<8x128xf32>
    %cst_12 = arith.constant 1.000000e+00 : f32
    %27 = vector.broadcast %cst_12 : f32 to vector<8x128xf32>
    %28 = arith.addf %27, %26 : vector<8x128xf32>
    %29 = arith.divf %27, %28 : vector<8x128xf32>
    %30 = vector.extract_strided_slice %10 {offsets = [0, 256], sizes = [8, 128], strides = [1, 1]} : vector<8x384xf32> to vector<8x128xf32>
    %31 = vector.extract_strided_slice %13 {offsets = [0, 256], sizes = [8, 128], strides = [1, 1]} : vector<8x384xf32> to vector<8x128xf32>
    %32 = arith.mulf %21, %31 : vector<8x128xf32>
    %33 = arith.addf %30, %32 : vector<8x128xf32>
    %34 = math.tanh %33 : vector<8x128xf32>
    %cst_13 = arith.constant 1.000000e+00 : f32
    %35 = vector.broadcast %cst_13 : f32 to vector<8x128xf32>
    %36 = arith.subf %35, %29 : vector<8x128xf32>
    %37 = arith.mulf %36, %34 : vector<8x128xf32>
    %38 = arith.mulf %29, %4 : vector<8x128xf32>
    %39 = arith.addf %37, %38 : vector<8x128xf32>
    %c1_i32 = arith.constant 1 : i32
    %40 = arith.index_cast %c1_i32 : i32 to index
    %c0_14 = arith.constant 0 : index
    %c0_15 = arith.constant 0 : index
    %41 = vector.load %arg0[%40, %c0_14, %c0_15] : memref<8x8x16xf32, #tpu.memory_space<vmem>>, vector<1x8x16xf32>
    %42 = vector.shape_cast %41 : vector<1x8x16xf32> to vector<8x16xf32>
    %cst_16 = arith.constant dense<0.000000e+00> : vector<8x384xf32>
    %43 = tpu.matmul %42, %0, %cst_16 {dimension_numbers = #tpu.dot_dimension_numbers<[1], [0], [0], [1], [0, 0, 1, 1], [], []>} : vector<8x16xf32>, vector<16x384xf32>, vector<8x384xf32> -> vector<8x384xf32>
    %44 = vector.broadcast %2 : vector<1x384xf32> to vector<8x384xf32>
    %45 = arith.addf %43, %44 : vector<8x384xf32>
    %cst_17 = arith.constant dense<0.000000e+00> : vector<8x384xf32>
    %46 = tpu.matmul %39, %1, %cst_17 {dimension_numbers = #tpu.dot_dimension_numbers<[1], [0], [0], [1], [0, 0, 1, 1], [], []>} : vector<8x128xf32>, vector<128x384xf32>, vector<8x384xf32> -> vector<8x384xf32>
    %47 = vector.broadcast %3 : vector<1x384xf32> to vector<8x384xf32>
    %48 = arith.addf %46, %47 : vector<8x384xf32>
    %49 = vector.extract_strided_slice %45 {offsets = [0, 0], sizes = [8, 128], strides = [1, 1]} : vector<8x384xf32> to vector<8x128xf32>
    %50 = vector.extract_strided_slice %48 {offsets = [0, 0], sizes = [8, 128], strides = [1, 1]} : vector<8x384xf32> to vector<8x128xf32>
    %51 = arith.addf %49, %50 : vector<8x128xf32>
    %52 = arith.negf %51 : vector<8x128xf32>
    %53 = math.exp %52 : vector<8x128xf32>
    %cst_18 = arith.constant 1.000000e+00 : f32
    %54 = vector.broadcast %cst_18 : f32 to vector<8x128xf32>
    %55 = arith.addf %54, %53 : vector<8x128xf32>
    %56 = arith.divf %54, %55 : vector<8x128xf32>
    %57 = vector.extract_strided_slice %45 {offsets = [0, 128], sizes = [8, 128], strides = [1, 1]} : vector<8x384xf32> to vector<8x128xf32>
    %58 = vector.extract_strided_slice %48 {offsets = [0, 128], sizes = [8, 128], strides = [1, 1]} : vector<8x384xf32> to vector<8x128xf32>
    %59 = arith.addf %57, %58 : vector<8x128xf32>
    %60 = arith.negf %59 : vector<8x128xf32>
    %61 = math.exp %60 : vector<8x128xf32>
    %cst_19 = arith.constant 1.000000e+00 : f32
    %62 = vector.broadcast %cst_19 : f32 to vector<8x128xf32>
    %63 = arith.addf %62, %61 : vector<8x128xf32>
    %64 = arith.divf %62, %63 : vector<8x128xf32>
    %65 = vector.extract_strided_slice %45 {offsets = [0, 256], sizes = [8, 128], strides = [1, 1]} : vector<8x384xf32> to vector<8x128xf32>
    %66 = vector.extract_strided_slice %48 {offsets = [0, 256], sizes = [8, 128], strides = [1, 1]} : vector<8x384xf32> to vector<8x128xf32>
    %67 = arith.mulf %56, %66 : vector<8x128xf32>
    %68 = arith.addf %65, %67 : vector<8x128xf32>
    %69 = math.tanh %68 : vector<8x128xf32>
    %cst_20 = arith.constant 1.000000e+00 : f32
    %70 = vector.broadcast %cst_20 : f32 to vector<8x128xf32>
    %71 = arith.subf %70, %64 : vector<8x128xf32>
    %72 = arith.mulf %71, %69 : vector<8x128xf32>
    %73 = arith.mulf %64, %39 : vector<8x128xf32>
    %74 = arith.addf %72, %73 : vector<8x128xf32>
    %c2_i32 = arith.constant 2 : i32
    %75 = arith.index_cast %c2_i32 : i32 to index
    %c0_21 = arith.constant 0 : index
    %c0_22 = arith.constant 0 : index
    %76 = vector.load %arg0[%75, %c0_21, %c0_22] : memref<8x8x16xf32, #tpu.memory_space<vmem>>, vector<1x8x16xf32>
    %77 = vector.shape_cast %76 : vector<1x8x16xf32> to vector<8x16xf32>
    %cst_23 = arith.constant dense<0.000000e+00> : vector<8x384xf32>
    %78 = tpu.matmul %77, %0, %cst_23 {dimension_numbers = #tpu.dot_dimension_numbers<[1], [0], [0], [1], [0, 0, 1, 1], [], []>} : vector<8x16xf32>, vector<16x384xf32>, vector<8x384xf32> -> vector<8x384xf32>
    %79 = vector.broadcast %2 : vector<1x384xf32> to vector<8x384xf32>
    %80 = arith.addf %78, %79 : vector<8x384xf32>
    %cst_24 = arith.constant dense<0.000000e+00> : vector<8x384xf32>
    %81 = tpu.matmul %74, %1, %cst_24 {dimension_numbers = #tpu.dot_dimension_numbers<[1], [0], [0], [1], [0, 0, 1, 1], [], []>} : vector<8x128xf32>, vector<128x384xf32>, vector<8x384xf32> -> vector<8x384xf32>
    %82 = vector.broadcast %3 : vector<1x384xf32> to vector<8x384xf32>
    %83 = arith.addf %81, %82 : vector<8x384xf32>
    %84 = vector.extract_strided_slice %80 {offsets = [0, 0], sizes = [8, 128], strides = [1, 1]} : vector<8x384xf32> to vector<8x128xf32>
    %85 = vector.extract_strided_slice %83 {offsets = [0, 0], sizes = [8, 128], strides = [1, 1]} : vector<8x384xf32> to vector<8x128xf32>
    %86 = arith.addf %84, %85 : vector<8x128xf32>
    %87 = arith.negf %86 : vector<8x128xf32>
    %88 = math.exp %87 : vector<8x128xf32>
    %cst_25 = arith.constant 1.000000e+00 : f32
    %89 = vector.broadcast %cst_25 : f32 to vector<8x128xf32>
    %90 = arith.addf %89, %88 : vector<8x128xf32>
    %91 = arith.divf %89, %90 : vector<8x128xf32>
    %92 = vector.extract_strided_slice %80 {offsets = [0, 128], sizes = [8, 128], strides = [1, 1]} : vector<8x384xf32> to vector<8x128xf32>
    %93 = vector.extract_strided_slice %83 {offsets = [0, 128], sizes = [8, 128], strides = [1, 1]} : vector<8x384xf32> to vector<8x128xf32>
    %94 = arith.addf %92, %93 : vector<8x128xf32>
    %95 = arith.negf %94 : vector<8x128xf32>
    %96 = math.exp %95 : vector<8x128xf32>
    %cst_26 = arith.constant 1.000000e+00 : f32
    %97 = vector.broadcast %cst_26 : f32 to vector<8x128xf32>
    %98 = arith.addf %97, %96 : vector<8x128xf32>
    %99 = arith.divf %97, %98 : vector<8x128xf32>
    %100 = vector.extract_strided_slice %80 {offsets = [0, 256], sizes = [8, 128], strides = [1, 1]} : vector<8x384xf32> to vector<8x128xf32>
    %101 = vector.extract_strided_slice %83 {offsets = [0, 256], sizes = [8, 128], strides = [1, 1]} : vector<8x384xf32> to vector<8x128xf32>
    %102 = arith.mulf %91, %101 : vector<8x128xf32>
    %103 = arith.addf %100, %102 : vector<8x128xf32>
    %104 = math.tanh %103 : vector<8x128xf32>
    %cst_27 = arith.constant 1.000000e+00 : f32
    %105 = vector.broadcast %cst_27 : f32 to vector<8x128xf32>
    %106 = arith.subf %105, %99 : vector<8x128xf32>
    %107 = arith.mulf %106, %104 : vector<8x128xf32>
    %108 = arith.mulf %99, %74 : vector<8x128xf32>
    %109 = arith.addf %107, %108 : vector<8x128xf32>
    %c3_i32 = arith.constant 3 : i32
    %110 = arith.index_cast %c3_i32 : i32 to index
    %c0_28 = arith.constant 0 : index
    %c0_29 = arith.constant 0 : index
    %111 = vector.load %arg0[%110, %c0_28, %c0_29] : memref<8x8x16xf32, #tpu.memory_space<vmem>>, vector<1x8x16xf32>
    %112 = vector.shape_cast %111 : vector<1x8x16xf32> to vector<8x16xf32>
    %cst_30 = arith.constant dense<0.000000e+00> : vector<8x384xf32>
    %113 = tpu.matmul %112, %0, %cst_30 {dimension_numbers = #tpu.dot_dimension_numbers<[1], [0], [0], [1], [0, 0, 1, 1], [], []>} : vector<8x16xf32>, vector<16x384xf32>, vector<8x384xf32> -> vector<8x384xf32>
    %114 = vector.broadcast %2 : vector<1x384xf32> to vector<8x384xf32>
    %115 = arith.addf %113, %114 : vector<8x384xf32>
    %cst_31 = arith.constant dense<0.000000e+00> : vector<8x384xf32>
    %116 = tpu.matmul %109, %1, %cst_31 {dimension_numbers = #tpu.dot_dimension_numbers<[1], [0], [0], [1], [0, 0, 1, 1], [], []>} : vector<8x128xf32>, vector<128x384xf32>, vector<8x384xf32> -> vector<8x384xf32>
    %117 = vector.broadcast %3 : vector<1x384xf32> to vector<8x384xf32>
    %118 = arith.addf %116, %117 : vector<8x384xf32>
    %119 = vector.extract_strided_slice %115 {offsets = [0, 0], sizes = [8, 128], strides = [1, 1]} : vector<8x384xf32> to vector<8x128xf32>
    %120 = vector.extract_strided_slice %118 {offsets = [0, 0], sizes = [8, 128], strides = [1, 1]} : vector<8x384xf32> to vector<8x128xf32>
    %121 = arith.addf %119, %120 : vector<8x128xf32>
    %122 = arith.negf %121 : vector<8x128xf32>
    %123 = math.exp %122 : vector<8x128xf32>
    %cst_32 = arith.constant 1.000000e+00 : f32
    %124 = vector.broadcast %cst_32 : f32 to vector<8x128xf32>
    %125 = arith.addf %124, %123 : vector<8x128xf32>
    %126 = arith.divf %124, %125 : vector<8x128xf32>
    %127 = vector.extract_strided_slice %115 {offsets = [0, 128], sizes = [8, 128], strides = [1, 1]} : vector<8x384xf32> to vector<8x128xf32>
    %128 = vector.extract_strided_slice %118 {offsets = [0, 128], sizes = [8, 128], strides = [1, 1]} : vector<8x384xf32> to vector<8x128xf32>
    %129 = arith.addf %127, %128 : vector<8x128xf32>
    %130 = arith.negf %129 : vector<8x128xf32>
    %131 = math.exp %130 : vector<8x128xf32>
    %cst_33 = arith.constant 1.000000e+00 : f32
    %132 = vector.broadcast %cst_33 : f32 to vector<8x128xf32>
    %133 = arith.addf %132, %131 : vector<8x128xf32>
    %134 = arith.divf %132, %133 : vector<8x128xf32>
    %135 = vector.extract_strided_slice %115 {offsets = [0, 256], sizes = [8, 128], strides = [1, 1]} : vector<8x384xf32> to vector<8x128xf32>
    %136 = vector.extract_strided_slice %118 {offsets = [0, 256], sizes = [8, 128], strides = [1, 1]} : vector<8x384xf32> to vector<8x128xf32>
    %137 = arith.mulf %126, %136 : vector<8x128xf32>
    %138 = arith.addf %135, %137 : vector<8x128xf32>
    %139 = math.tanh %138 : vector<8x128xf32>
    %cst_34 = arith.constant 1.000000e+00 : f32
    %140 = vector.broadcast %cst_34 : f32 to vector<8x128xf32>
    %141 = arith.subf %140, %134 : vector<8x128xf32>
    %142 = arith.mulf %141, %139 : vector<8x128xf32>
    %143 = arith.mulf %134, %109 : vector<8x128xf32>
    %144 = arith.addf %142, %143 : vector<8x128xf32>
    %c4_i32 = arith.constant 4 : i32
    %145 = arith.index_cast %c4_i32 : i32 to index
    %c0_35 = arith.constant 0 : index
    %c0_36 = arith.constant 0 : index
    %146 = vector.load %arg0[%145, %c0_35, %c0_36] : memref<8x8x16xf32, #tpu.memory_space<vmem>>, vector<1x8x16xf32>
    %147 = vector.shape_cast %146 : vector<1x8x16xf32> to vector<8x16xf32>
    %cst_37 = arith.constant dense<0.000000e+00> : vector<8x384xf32>
    %148 = tpu.matmul %147, %0, %cst_37 {dimension_numbers = #tpu.dot_dimension_numbers<[1], [0], [0], [1], [0, 0, 1, 1], [], []>} : vector<8x16xf32>, vector<16x384xf32>, vector<8x384xf32> -> vector<8x384xf32>
    %149 = vector.broadcast %2 : vector<1x384xf32> to vector<8x384xf32>
    %150 = arith.addf %148, %149 : vector<8x384xf32>
    %cst_38 = arith.constant dense<0.000000e+00> : vector<8x384xf32>
    %151 = tpu.matmul %144, %1, %cst_38 {dimension_numbers = #tpu.dot_dimension_numbers<[1], [0], [0], [1], [0, 0, 1, 1], [], []>} : vector<8x128xf32>, vector<128x384xf32>, vector<8x384xf32> -> vector<8x384xf32>
    %152 = vector.broadcast %3 : vector<1x384xf32> to vector<8x384xf32>
    %153 = arith.addf %151, %152 : vector<8x384xf32>
    %154 = vector.extract_strided_slice %150 {offsets = [0, 0], sizes = [8, 128], strides = [1, 1]} : vector<8x384xf32> to vector<8x128xf32>
    %155 = vector.extract_strided_slice %153 {offsets = [0, 0], sizes = [8, 128], strides = [1, 1]} : vector<8x384xf32> to vector<8x128xf32>
    %156 = arith.addf %154, %155 : vector<8x128xf32>
    %157 = arith.negf %156 : vector<8x128xf32>
    %158 = math.exp %157 : vector<8x128xf32>
    %cst_39 = arith.constant 1.000000e+00 : f32
    %159 = vector.broadcast %cst_39 : f32 to vector<8x128xf32>
    %160 = arith.addf %159, %158 : vector<8x128xf32>
    %161 = arith.divf %159, %160 : vector<8x128xf32>
    %162 = vector.extract_strided_slice %150 {offsets = [0, 128], sizes = [8, 128], strides = [1, 1]} : vector<8x384xf32> to vector<8x128xf32>
    %163 = vector.extract_strided_slice %153 {offsets = [0, 128], sizes = [8, 128], strides = [1, 1]} : vector<8x384xf32> to vector<8x128xf32>
    %164 = arith.addf %162, %163 : vector<8x128xf32>
    %165 = arith.negf %164 : vector<8x128xf32>
    %166 = math.exp %165 : vector<8x128xf32>
    %cst_40 = arith.constant 1.000000e+00 : f32
    %167 = vector.broadcast %cst_40 : f32 to vector<8x128xf32>
    %168 = arith.addf %167, %166 : vector<8x128xf32>
    %169 = arith.divf %167, %168 : vector<8x128xf32>
    %170 = vector.extract_strided_slice %150 {offsets = [0, 256], sizes = [8, 128], strides = [1, 1]} : vector<8x384xf32> to vector<8x128xf32>
    %171 = vector.extract_strided_slice %153 {offsets = [0, 256], sizes = [8, 128], strides = [1, 1]} : vector<8x384xf32> to vector<8x128xf32>
    %172 = arith.mulf %161, %171 : vector<8x128xf32>
    %173 = arith.addf %170, %172 : vector<8x128xf32>
    %174 = math.tanh %173 : vector<8x128xf32>
    %cst_41 = arith.constant 1.000000e+00 : f32
    %175 = vector.broadcast %cst_41 : f32 to vector<8x128xf32>
    %176 = arith.subf %175, %169 : vector<8x128xf32>
    %177 = arith.mulf %176, %174 : vector<8x128xf32>
    %178 = arith.mulf %169, %144 : vector<8x128xf32>
    %179 = arith.addf %177, %178 : vector<8x128xf32>
    %c5_i32 = arith.constant 5 : i32
    %180 = arith.index_cast %c5_i32 : i32 to index
    %c0_42 = arith.constant 0 : index
    %c0_43 = arith.constant 0 : index
    %181 = vector.load %arg0[%180, %c0_42, %c0_43] : memref<8x8x16xf32, #tpu.memory_space<vmem>>, vector<1x8x16xf32>
    %182 = vector.shape_cast %181 : vector<1x8x16xf32> to vector<8x16xf32>
    %cst_44 = arith.constant dense<0.000000e+00> : vector<8x384xf32>
    %183 = tpu.matmul %182, %0, %cst_44 {dimension_numbers = #tpu.dot_dimension_numbers<[1], [0], [0], [1], [0, 0, 1, 1], [], []>} : vector<8x16xf32>, vector<16x384xf32>, vector<8x384xf32> -> vector<8x384xf32>
    %184 = vector.broadcast %2 : vector<1x384xf32> to vector<8x384xf32>
    %185 = arith.addf %183, %184 : vector<8x384xf32>
    %cst_45 = arith.constant dense<0.000000e+00> : vector<8x384xf32>
    %186 = tpu.matmul %179, %1, %cst_45 {dimension_numbers = #tpu.dot_dimension_numbers<[1], [0], [0], [1], [0, 0, 1, 1], [], []>} : vector<8x128xf32>, vector<128x384xf32>, vector<8x384xf32> -> vector<8x384xf32>
    %187 = vector.broadcast %3 : vector<1x384xf32> to vector<8x384xf32>
    %188 = arith.addf %186, %187 : vector<8x384xf32>
    %189 = vector.extract_strided_slice %185 {offsets = [0, 0], sizes = [8, 128], strides = [1, 1]} : vector<8x384xf32> to vector<8x128xf32>
    %190 = vector.extract_strided_slice %188 {offsets = [0, 0], sizes = [8, 128], strides = [1, 1]} : vector<8x384xf32> to vector<8x128xf32>
    %191 = arith.addf %189, %190 : vector<8x128xf32>
    %192 = arith.negf %191 : vector<8x128xf32>
    %193 = math.exp %192 : vector<8x128xf32>
    %cst_46 = arith.constant 1.000000e+00 : f32
    %194 = vector.broadcast %cst_46 : f32 to vector<8x128xf32>
    %195 = arith.addf %194, %193 : vector<8x128xf32>
    %196 = arith.divf %194, %195 : vector<8x128xf32>
    %197 = vector.extract_strided_slice %185 {offsets = [0, 128], sizes = [8, 128], strides = [1, 1]} : vector<8x384xf32> to vector<8x128xf32>
    %198 = vector.extract_strided_slice %188 {offsets = [0, 128], sizes = [8, 128], strides = [1, 1]} : vector<8x384xf32> to vector<8x128xf32>
    %199 = arith.addf %197, %198 : vector<8x128xf32>
    %200 = arith.negf %199 : vector<8x128xf32>
    %201 = math.exp %200 : vector<8x128xf32>
    %cst_47 = arith.constant 1.000000e+00 : f32
    %202 = vector.broadcast %cst_47 : f32 to vector<8x128xf32>
    %203 = arith.addf %202, %201 : vector<8x128xf32>
    %204 = arith.divf %202, %203 : vector<8x128xf32>
    %205 = vector.extract_strided_slice %185 {offsets = [0, 256], sizes = [8, 128], strides = [1, 1]} : vector<8x384xf32> to vector<8x128xf32>
    %206 = vector.extract_strided_slice %188 {offsets = [0, 256], sizes = [8, 128], strides = [1, 1]} : vector<8x384xf32> to vector<8x128xf32>
    %207 = arith.mulf %196, %206 : vector<8x128xf32>
    %208 = arith.addf %205, %207 : vector<8x128xf32>
    %209 = math.tanh %208 : vector<8x128xf32>
    %cst_48 = arith.constant 1.000000e+00 : f32
    %210 = vector.broadcast %cst_48 : f32 to vector<8x128xf32>
    %211 = arith.subf %210, %204 : vector<8x128xf32>
    %212 = arith.mulf %211, %209 : vector<8x128xf32>
    %213 = arith.mulf %204, %179 : vector<8x128xf32>
    %214 = arith.addf %212, %213 : vector<8x128xf32>
    %c6_i32 = arith.constant 6 : i32
    %215 = arith.index_cast %c6_i32 : i32 to index
    %c0_49 = arith.constant 0 : index
    %c0_50 = arith.constant 0 : index
    %216 = vector.load %arg0[%215, %c0_49, %c0_50] : memref<8x8x16xf32, #tpu.memory_space<vmem>>, vector<1x8x16xf32>
    %217 = vector.shape_cast %216 : vector<1x8x16xf32> to vector<8x16xf32>
    %cst_51 = arith.constant dense<0.000000e+00> : vector<8x384xf32>
    %218 = tpu.matmul %217, %0, %cst_51 {dimension_numbers = #tpu.dot_dimension_numbers<[1], [0], [0], [1], [0, 0, 1, 1], [], []>} : vector<8x16xf32>, vector<16x384xf32>, vector<8x384xf32> -> vector<8x384xf32>
    %219 = vector.broadcast %2 : vector<1x384xf32> to vector<8x384xf32>
    %220 = arith.addf %218, %219 : vector<8x384xf32>
    %cst_52 = arith.constant dense<0.000000e+00> : vector<8x384xf32>
    %221 = tpu.matmul %214, %1, %cst_52 {dimension_numbers = #tpu.dot_dimension_numbers<[1], [0], [0], [1], [0, 0, 1, 1], [], []>} : vector<8x128xf32>, vector<128x384xf32>, vector<8x384xf32> -> vector<8x384xf32>
    %222 = vector.broadcast %3 : vector<1x384xf32> to vector<8x384xf32>
    %223 = arith.addf %221, %222 : vector<8x384xf32>
    %224 = vector.extract_strided_slice %220 {offsets = [0, 0], sizes = [8, 128], strides = [1, 1]} : vector<8x384xf32> to vector<8x128xf32>
    %225 = vector.extract_strided_slice %223 {offsets = [0, 0], sizes = [8, 128], strides = [1, 1]} : vector<8x384xf32> to vector<8x128xf32>
    %226 = arith.addf %224, %225 : vector<8x128xf32>
    %227 = arith.negf %226 : vector<8x128xf32>
    %228 = math.exp %227 : vector<8x128xf32>
    %cst_53 = arith.constant 1.000000e+00 : f32
    %229 = vector.broadcast %cst_53 : f32 to vector<8x128xf32>
    %230 = arith.addf %229, %228 : vector<8x128xf32>
    %231 = arith.divf %229, %230 : vector<8x128xf32>
    %232 = vector.extract_strided_slice %220 {offsets = [0, 128], sizes = [8, 128], strides = [1, 1]} : vector<8x384xf32> to vector<8x128xf32>
    %233 = vector.extract_strided_slice %223 {offsets = [0, 128], sizes = [8, 128], strides = [1, 1]} : vector<8x384xf32> to vector<8x128xf32>
    %234 = arith.addf %232, %233 : vector<8x128xf32>
    %235 = arith.negf %234 : vector<8x128xf32>
    %236 = math.exp %235 : vector<8x128xf32>
    %cst_54 = arith.constant 1.000000e+00 : f32
    %237 = vector.broadcast %cst_54 : f32 to vector<8x128xf32>
    %238 = arith.addf %237, %236 : vector<8x128xf32>
    %239 = arith.divf %237, %238 : vector<8x128xf32>
    %240 = vector.extract_strided_slice %220 {offsets = [0, 256], sizes = [8, 128], strides = [1, 1]} : vector<8x384xf32> to vector<8x128xf32>
    %241 = vector.extract_strided_slice %223 {offsets = [0, 256], sizes = [8, 128], strides = [1, 1]} : vector<8x384xf32> to vector<8x128xf32>
    %242 = arith.mulf %231, %241 : vector<8x128xf32>
    %243 = arith.addf %240, %242 : vector<8x128xf32>
    %244 = math.tanh %243 : vector<8x128xf32>
    %cst_55 = arith.constant 1.000000e+00 : f32
    %245 = vector.broadcast %cst_55 : f32 to vector<8x128xf32>
    %246 = arith.subf %245, %239 : vector<8x128xf32>
    %247 = arith.mulf %246, %244 : vector<8x128xf32>
    %248 = arith.mulf %239, %214 : vector<8x128xf32>
    %249 = arith.addf %247, %248 : vector<8x128xf32>
    %c7_i32 = arith.constant 7 : i32
    %250 = arith.index_cast %c7_i32 : i32 to index
    %c0_56 = arith.constant 0 : index
    %c0_57 = arith.constant 0 : index
    %251 = vector.load %arg0[%250, %c0_56, %c0_57] : memref<8x8x16xf32, #tpu.memory_space<vmem>>, vector<1x8x16xf32>
    %252 = vector.shape_cast %251 : vector<1x8x16xf32> to vector<8x16xf32>
    %cst_58 = arith.constant dense<0.000000e+00> : vector<8x384xf32>
    %253 = tpu.matmul %252, %0, %cst_58 {dimension_numbers = #tpu.dot_dimension_numbers<[1], [0], [0], [1], [0, 0, 1, 1], [], []>} : vector<8x16xf32>, vector<16x384xf32>, vector<8x384xf32> -> vector<8x384xf32>
    %254 = vector.broadcast %2 : vector<1x384xf32> to vector<8x384xf32>
    %255 = arith.addf %253, %254 : vector<8x384xf32>
    %cst_59 = arith.constant dense<0.000000e+00> : vector<8x384xf32>
    %256 = tpu.matmul %249, %1, %cst_59 {dimension_numbers = #tpu.dot_dimension_numbers<[1], [0], [0], [1], [0, 0, 1, 1], [], []>} : vector<8x128xf32>, vector<128x384xf32>, vector<8x384xf32> -> vector<8x384xf32>
    %257 = vector.broadcast %3 : vector<1x384xf32> to vector<8x384xf32>
    %258 = arith.addf %256, %257 : vector<8x384xf32>
    %259 = vector.extract_strided_slice %255 {offsets = [0, 0], sizes = [8, 128], strides = [1, 1]} : vector<8x384xf32> to vector<8x128xf32>
    %260 = vector.extract_strided_slice %258 {offsets = [0, 0], sizes = [8, 128], strides = [1, 1]} : vector<8x384xf32> to vector<8x128xf32>
    %261 = arith.addf %259, %260 : vector<8x128xf32>
    %262 = arith.negf %261 : vector<8x128xf32>
    %263 = math.exp %262 : vector<8x128xf32>
    %cst_60 = arith.constant 1.000000e+00 : f32
    %264 = vector.broadcast %cst_60 : f32 to vector<8x128xf32>
    %265 = arith.addf %264, %263 : vector<8x128xf32>
    %266 = arith.divf %264, %265 : vector<8x128xf32>
    %267 = vector.extract_strided_slice %255 {offsets = [0, 128], sizes = [8, 128], strides = [1, 1]} : vector<8x384xf32> to vector<8x128xf32>
    %268 = vector.extract_strided_slice %258 {offsets = [0, 128], sizes = [8, 128], strides = [1, 1]} : vector<8x384xf32> to vector<8x128xf32>
    %269 = arith.addf %267, %268 : vector<8x128xf32>
    %270 = arith.negf %269 : vector<8x128xf32>
    %271 = math.exp %270 : vector<8x128xf32>
    %cst_61 = arith.constant 1.000000e+00 : f32
    %272 = vector.broadcast %cst_61 : f32 to vector<8x128xf32>
    %273 = arith.addf %272, %271 : vector<8x128xf32>
    %274 = arith.divf %272, %273 : vector<8x128xf32>
    %275 = vector.extract_strided_slice %255 {offsets = [0, 256], sizes = [8, 128], strides = [1, 1]} : vector<8x384xf32> to vector<8x128xf32>
    %276 = vector.extract_strided_slice %258 {offsets = [0, 256], sizes = [8, 128], strides = [1, 1]} : vector<8x384xf32> to vector<8x128xf32>
    %277 = arith.mulf %266, %276 : vector<8x128xf32>
    %278 = arith.addf %275, %277 : vector<8x128xf32>
    %279 = math.tanh %278 : vector<8x128xf32>
    %cst_62 = arith.constant 1.000000e+00 : f32
    %280 = vector.broadcast %cst_62 : f32 to vector<8x128xf32>
    %281 = arith.subf %280, %274 : vector<8x128xf32>
    %282 = arith.mulf %281, %279 : vector<8x128xf32>
    %283 = arith.mulf %274, %249 : vector<8x128xf32>
    %284 = arith.addf %282, %283 : vector<8x128xf32>
    %c8_i32 = arith.constant 8 : i32
    %c0_63 = arith.constant 0 : index
    %c0_64 = arith.constant 0 : index
    %285 = vector.load %arg5[%c0_63, %c0_64] : memref<128x128xf32, #tpu.memory_space<vmem>>, vector<128x128xf32>
    %cst_65 = arith.constant dense<0.000000e+00> : vector<8x128xf32>
    %286 = tpu.matmul %284, %285, %cst_65 {dimension_numbers = #tpu.dot_dimension_numbers<[1], [0], [0], [1], [0, 0, 1, 1], [], []>} : vector<8x128xf32>, vector<128x128xf32>, vector<8x128xf32> -> vector<8x128xf32>
    %c0_66 = arith.constant 0 : index
    %c0_67 = arith.constant 0 : index
    %287 = vector.load %arg6[%c0_66, %c0_67] : memref<1x128xf32, #tpu.memory_space<vmem>>, vector<1x128xf32>
    %288 = vector.broadcast %287 : vector<1x128xf32> to vector<8x128xf32>
    %289 = arith.addf %286, %288 : vector<8x128xf32>
    %c0_68 = arith.constant 0 : index
    %c0_69 = arith.constant 0 : index
    %290 = vector.load %arg7[%c0_68, %c0_69] : memref<8x128xf32, #tpu.memory_space<vmem>>, vector<8x128xf32>
    tpu.vector_store %arg7[%c0_68, %c0_69], %289 {strides = array<i32>} : memref<8x128xf32, #tpu.memory_space<vmem>>, vector<8x128xf32>,
    return
  }
}

</mosaic_0001>

<bundles_post_ra>
// kernel: tpu_custom_call.1
= control target key start
LH: loop header
LB: loop body
LE: loop exit
PB: predicated region body
PF: predicated region fallthrough
CT: control target
= control target key end

     0   :  { %12 = vsyncpa [#allocation3], 0  ;;  %s4759_s0 = inlined_call_operand.hbm [shape: f32[8,8,16], index: 0, kind: input, shape index: {}]   ;;  %s4760_s1 = inlined_call_operand.hbm [shape: f32[16,384], index: 1, kind: input, shape index: {}]   ;;  %s4761_s2 = inlined_call_operand.hbm [shape: f32[128,384], index: 2, kind: input, shape index: {}]   ;;  %s4762_s3 = inlined_call_operand.vmem [shape: f32[1,384], index: 3, kind: input, shape index: {}]   ;;  %s4763_s4 = inlined_call_operand.vmem [shape: f32[1,384], index: 4, kind: input, shape index: {}]   ;;  %s4764_s5 = inlined_call_operand.hbm [shape: f32[128,128], index: 5, kind: input, shape index: {}]   ;;  %s4765_s6 = inlined_call_operand.vmem [shape: f32[1,128], index: 6, kind: input, shape index: {}]   ;;  %s4766_s7 = inlined_call_operand.hbm [shape: f32[8,128], index: 7, kind: output, shape index: {}]  }
   0x1   :  { %13 = vsyncpa [#allocation6], 0 }
   0x2   :  { %14 = vsyncpa [#allocation9], 0 }
   0x3   :  { %15 = vsyncpa [#allocation4], 0  ;;  %s4112_s24 = smov [#allocation5]   ;;  %s3994_s28 = scalar_lea.hbm %s4760_s1, 768 }
   0x4   :  { %s33_s25 = sshll.u32 %s4112_s24, 4  ;;  %p3995_p0 = scmp.ne.s32.totalorder %s4760_s1, %s3994_s28  ;;  %s34_s25 = int_to_ptr.vmem [resolvable:$true] %s33_s25 }
   0x5   :  { %p3998_p1 = scmp.lt.u32.totalorder %s3994_s28, %s4760_s1 }
   0x7   :  { %p4000_p2 = pnand %p3998_p1, %p3995_p0 }
   0x9   :  { %4003 = shalt.err (!%p4000_p2)
}
   0xa   :  { %s4004_s10 = scalar_lea.vmem %s34_s25, 768  ;;  %p4009_p4 = scmp.lt.s32.totalorder %s34_s25, %s34_s25 }
   0xb   :  { %p4005_p3 = scmp.ne.s32.totalorder %s34_s25, %s4004_s10  ;;  %p4010_p5 = scmp.lt.s32.totalorder %s4004_s10, %s4004_s10 }
   0xd   :  { %p4011_p6 = por %p4010_p5, %p4009_p4 }
   0xf   :  { %p4012_p7 = pnand %p4011_p6, %p4005_p3 }
  0x11   :  { %4015 = shalt.err (!%p4012_p7)
}
  0x12   :  { %s4113_s11 = smov 384   ;;  %s4114_s12 = smov 24  }
  0x13   :  { %39 = dma.hbm_to_vmem [thread:$0]  %s4760_s1, 768, %s34_s25, [#allocation6], %s4113_s11, %s4113_s11, %s4114_s12  }
  0x14   :  { %s4115_s15 = smov [#allocation2]   ;;  %s4016_s19 = scalar_lea.hbm %s4759_s0, 1024 }
  0x15   :  { %s21_s16 = sshll.u32 %s4115_s15, 4  ;;  %p4017_p8 = scmp.ne.s32.totalorder %s4759_s0, %s4016_s19  ;;  %s22_s16 = int_to_ptr.vmem [resolvable:$true] %s21_s16 }
  0x16   :  { %p4020_p9 = scmp.lt.u32.totalorder %s4016_s19, %s4759_s0 }
  0x18   :  { %p4022_p10 = pnand %p4020_p9, %p4017_p8 }
  0x1a   :  { %4025 = shalt.err (!%p4022_p10)
}
  0x1b   :  { %s4026_s24 = scalar_lea.vmem %s22_s16, 1024  ;;  %p4031_p12 = scmp.lt.s32.totalorder %s22_s16, %s22_s16 }
  0x1c   :  { %p4027_p11 = scmp.ne.s32.totalorder %s22_s16, %s4026_s24  ;;  %p4032_p13 = scmp.lt.s32.totalorder %s4026_s24, %s4026_s24 }
  0x1e   :  { %p4033_p0 = por %p4032_p13, %p4031_p12 }
  0x20   :  { %p4034_p1 = pnand %p4033_p0, %p4027_p11 }
  0x22   :  { %4037 = shalt.err (!%p4034_p1)
}
  0x23   :  { %s4116_s1 = smov 128   ;;  %s4117_s25 = smov 8  }
  0x24   :  { %27 = dma.hbm_to_vmem [thread:$0]  %s4759_s0, 1024, %s22_s16, [#allocation3], %s4116_s1, %s4116_s1, %s4117_s25  }
  0x25   :  { %s4118_s28 = smov [#allocation7]   ;;  %s4119_s30 = smov [#allocation8]  }
  0x26   :  { %s45_s29 = sshll.u32 %s4118_s28, 4  ;;  %s61_s8 = sshll.u32 %s4119_s30, 4  ;;  %s46_s29 = int_to_ptr.vmem [resolvable:$true] %s45_s29  ;;  %s4194_s8 = int_to_ptr.vmem [resolvable:$true] %s61_s8 }
  0x27   :  { %s4038_s13 = scalar_lea.hbm %s4761_s2, 6144 }
  0x28   :  { %p4039_p2 = scmp.ne.s32.totalorder %s4761_s2, %s4038_s13  ;;  %p4042_p3 = scmp.lt.u32.totalorder %s4038_s13, %s4761_s2 }
  0x2a   :  { %p4044_p4 = pnand %p4042_p3, %p4039_p2 }
  0x2c   :  { %4047 = shalt.err (!%p4044_p4)
}
  0x2d   :  { %s4048_s0 = scalar_lea.vmem %s46_s29, 6144  ;;  %p4053_p6 = scmp.lt.s32.totalorder %s46_s29, %s46_s29 }
  0x2e   :  { %p4049_p5 = scmp.ne.s32.totalorder %s46_s29, %s4048_s0  ;;  %p4054_p7 = scmp.lt.s32.totalorder %s4048_s0, %s4048_s0 }
  0x30   :  { %p4055_p8 = por %p4054_p7, %p4053_p6 }
  0x32   :  { %p4056_p9 = pnand %p4055_p8, %p4049_p5 }
  0x34   :  { %4059 = shalt.err (!%p4056_p9)
}
  0x35   :  { %51 = dma.hbm_to_vmem [thread:$0]  %s4761_s2, 6144, %s46_s29, [#allocation6], %s4113_s11, %s4113_s11, %s4114_s12  }
  0x36   :  { %s4060_s22 = scalar_lea.hbm %s4764_s5, 2048 }
  0x37   :  { %p4061_p10 = scmp.ne.s32.totalorder %s4764_s5, %s4060_s22  ;;  %p4064_p11 = scmp.lt.u32.totalorder %s4060_s22, %s4764_s5 }
  0x39   :  { %p4066_p12 = pnand %p4064_p11, %p4061_p10 }
  0x3b   :  { %4069 = shalt.err (!%p4066_p12)
}
  0x3c   :  { %s4070_s28 = scalar_lea.vmem %s4194_s8, 2048  ;;  %p4075_p0 = scmp.lt.s32.totalorder %s4194_s8, %s4194_s8 }
  0x3d   :  { %p4071_p13 = scmp.ne.s32.totalorder %s4194_s8, %s4070_s28  ;;  %p4076_p1 = scmp.lt.s32.totalorder %s4070_s28, %s4070_s28 }
  0x3f   :  { %p4077_p2 = por %p4076_p1, %p4075_p0 }
  0x41   :  { %p4078_p3 = pnand %p4077_p2, %p4071_p13 }
  0x43   :  { %4081 = shalt.err (!%p4078_p3)
}
  0x44   :  { %67 = dma.hbm_to_vmem [thread:$0]  %s4764_s5, 2048, %s4194_s8, [#allocation9], %s4116_s1, %s4116_s1, %s4117_s25  }
  0x45   :  { %4104 = dma.done.wait [#allocation3], 1024  }
  0x46   :  { %4105 = vsyncadd [#allocation3], 4294966272 }
  0x47   :  { %4106 = dma.done.wait [#allocation6], 6912  }
  0x48   :  { %4107 = vsyncadd [#allocation6], 4294960384 }
  0x49   :  { %4108 = dma.done.wait [#allocation9], 2048  }
  0x4a   :  { %4109 = vsyncadd [#allocation9], 4294965248  ;;  %v4120_v0 = vmov 0.0   ;;  %v89_v1 = vld [vmem:[#allocation7 + $0x8] sm:$0xff]  ;;  %v92_v2 = vld [vmem:[#allocation7 + $0x20] sm:$0xff]  ;;  %vm155_vm0 = vcmask 130048  }
  0x4b   :  { %223 = vmatprep.mubr.f32.mxu1 %v4120_v0  ;;  %380 = vmatprep.mubr.f32.mxu0 %v4120_v0  ;;  %v88_v3 = vld [vmem:[#allocation7] sm:$0xff]  ;;  %v4233_v4 = vpack.c.bf16 %v92_v2, %v89_v1  ;;  %v91_v5 = vld [vmem:[#allocation7 + $0x18] sm:$0xff]  ;;  %v98_v7 = vld [vmem:[#allocation7 + $0x50] sm:$0xff]  ;;  %v4121_v35 = vmov 0.0|0.0   ;;  %vm4122_vm1 = vmmov 0   ;;  %s4123_s29 = smov [#allocation10]  }
  0x4c   :  { %v95_v6 = vld [vmem:[#allocation7 + $0x38] sm:$0xff]  ;;  %v4235_v8 = vpack.c.bf16 %v91_v5, %v88_v3  ;;  %v94_v10 = vld [vmem:[#allocation7 + $0x30] sm:$0xff]  ;;  %v97_v11 = vld [vmem:[#allocation7 + $0x48] sm:$0xff]  ;;  %s2734_s30 = sshll.u32 %s4123_s29, 4  ;;  %s2735_s30 = int_to_ptr.vmem [resolvable:$true] %s2734_s30 }
  0x4d   :  { %v4237_v9 = vpack.c.bf16 %v98_v7, %v95_v6  ;;  %v101_v12 = vld [vmem:[#allocation7 + $0x68] sm:$0xff]  ;;  %3334 = vmatprep.subr.bf16.mxu0 %v4233_v4  ;;  %v104_v13 = vld [vmem:[#allocation7 + $0x80] sm:$0xff]  ;;  %v4241_v14 = vpack.c.bf16 %v97_v11, %v94_v10  ;;  %v103_v17 = vld [vmem:[#allocation7 + $0x78] sm:$0xff]  ;;  %s4082_s8 = scalar_lea.vmem %s2735_s30, 128  ;;  %p4087_p5 = scmp.lt.s32.totalorder %s2735_s30, %s2735_s30 }
  0x4e   :  { %3336 = vmatpush1.bf16.msra.mxu0 %v4235_v8  ;;  %v4244_v15 = vpack.c.bf16 %v104_v13, %v101_v12  ;;  %v100_v16 = vld [vmem:[#allocation7 + $0x60] sm:$0xff]  ;;  %v107_v18 = vld [vmem:[#allocation7 + $0x98] sm:$0xff]  ;;  %v110_v19 = vld [vmem:[#allocation7 + $0xb0] sm:$0xff]  ;;  %p4083_p4 = scmp.ne.s32.totalorder %s2735_s30, %s4082_s8  ;;  %p4088_p6 = scmp.lt.s32.totalorder %s4082_s8, %s4082_s8 }
  0x4f   :  { %3338 = vmatprep.subr.bf16.mxu0 %v4237_v9  ;;  %v83_v20 = vld [vmem:[#allocation5 + $0x8] sm:$0xff]  ;;  %v86_v21 = vld [vmem:[#allocation5 + $0x20] sm:$0xff]  ;;  %v85_v24 = vld [vmem:[#allocation5 + $0x18] sm:$0xff]  ;;  %v4249_v25 = vpack.c.bf16 %v103_v17, %v100_v16  ;;  %v4254_v28 = vpack.c.bf16 %v110_v19, %v107_v18 }
  0x50   :  { %v4246_v22 = vpack.c.bf16 %v86_v21, %v83_v20  ;;  %v82_v23 = vld [vmem:[#allocation5] sm:$0xff]  ;;  %v109_v29 = vld [vmem:[#allocation7 + $0xa8] sm:$0xff]  ;;  %v84_v31 = vld [vmem:[#allocation5 + $0x10] sm:$0xff]  ;;  %p4089_p7 = por %p4088_p6, %p4087_p5 }
  0x51   :  { %v106_v26 = vld [vmem:[#allocation7 + $0x90] sm:$0xff]  ;;  %v4251_v27 = vpack.c.bf16 %v85_v24, %v82_v23  ;;  %v113_v30 = vld [vmem:[#allocation7 + $0xc8] sm:$0xff]  ;;  %v116_v32 = vld [vmem:[#allocation7 + $0xe0] sm:$0xff] }
  0x52   :  { %3340 = vmatpush1.bf16.msra.mxu0 %v4241_v14  ;;  %3327 = vmatprep.subr.bf16.mxu1 %v4246_v22  ;;  %v138_v33 = vld [vmem:[#allocation2] sm:$0xff]  ;;  %v87_v34 = vld [vmem:[#allocation5 + $0x28] sm:$0xff]  ;;  %v4262_v38 = vpack.c.bf16 %v109_v29, %v106_v26  ;;  %v93_v39 = vld [vmem:[#allocation7 + $0x28] sm:$0xff]  ;;  %v4265_v40 = vpack.c.bf16 %v116_v32, %v113_v30  ;;  %v140_v32 = vlaneseq  ;;  %p4090_p8 = pnand %p4089_p7, %p4083_p4 }
  0x53   :  { %3342 = vmatprep.subr.bf16.mxu0 %v4244_v15  ;;  %3329 = vmatpush1.bf16.msra.mxu1 %v4251_v27  ;;  %v4259_v36 = vpack.c.bf16 %v87_v34, %v84_v31  ;;  %v90_v37 = vld [vmem:[#allocation7 + $0x10] sm:$0xff]  ;;  %v112_v41 = vld [vmem:[#allocation7 + $0xc0] sm:$0xff]  ;;  %v115_v42 = vld [vmem:[#allocation7 + $0xd8] sm:$0xff] }
  0x54   :  { %3330 = vmatprep.subr.bf16.mxu1 %v4121_v35  ;;  %v119_v43 = vld [vmem:[#allocation7 + $0xf8] sm:$0xff]  ;;  %v122_v44 = vld [vmem:[#allocation7 + $0x110] sm:$0xff]  ;;  %v4271_v45 = vpack.c.bf16 %v93_v39, %v90_v37  ;;  %v96_v46 = vld [vmem:[#allocation7 + $0x40] sm:$0xff]  ;;  %v4275_v48 = vpack.c.bf16 %v115_v42, %v112_v41  ;;  %v141_v37 = vshrl.u32 %v140_v32, 7 }
  0x55   :  { %v99_v47 = vld [vmem:[#allocation7 + $0x58] sm:$0xff]  ;;  %v4278_v49 = vpack.c.bf16 %v122_v44, %v119_v43  ;;  %v118_v50 = vld [vmem:[#allocation7 + $0xf0] sm:$0xff]  ;;  %v121_v51 = vld [vmem:[#allocation7 + $0x108] sm:$0xff] }
  0x56   :  { %3344 = vmatpush1.bf16.msra.mxu0 %v4249_v25  ;;  %2745 = vmatmul.mubr.msk.f32.vlgmr.msra.gmra.mrb[0].mxu1 %vm155_vm0, %v138_v33  ;;  %v125_v52 = vld [vmem:[#allocation7 + $0x128] sm:$0xff]  ;;  %v128_v53 = vld [vmem:[#allocation7 + $0x140] sm:$0xff]  ;;  %v4282_v54 = vpack.c.bf16 %v99_v47, %v96_v46  ;;  %v102_v55 = vld [vmem:[#allocation7 + $0x70] sm:$0xff]  ;;  %v4288_v57 = vpack.c.bf16 %v121_v51, %v118_v50  ;;  %v142_v41 = vsub.s32 0, %v141_v37  ;;  %v146_v43 = vsub.s32 1, %v141_v37 }
  0x57   :  { %3346 = vmatprep.subr.bf16.mxu0 %v4254_v28  ;;  %3332 = vmatpush3.bf16.msra.mxu1 %v4259_v36  ;;  %v105_v56 = vld [vmem:[#allocation7 + $0x88] sm:$0xff]  ;;  %v4291_v58 = vpack.c.bf16 %v128_v53, %v125_v52  ;;  %v124_v59 = vld [vmem:[#allocation7 + $0x120] sm:$0xff]  ;;  %v127_v60 = vld [vmem:[#allocation7 + $0x138] sm:$0xff] }
  0x58   :  { %2959 = vmatprep.mubr.msk.f32.mxu1 %vm4122_vm1, %v4120_v0  ;;  %3365 = vmatprep.subr.bf16.mxu1 %v4121_v35  ;;  %v131_v61 = vld [vmem:[#allocation7 + $0x158] sm:$0xff]  ;;  %v134_v62 = vld [vmem:[#allocation7 + $0x170] sm:$0xff]  ;;  %v4294_v63 = vpack.c.bf16 %v105_v56, %v102_v55  ;;  %v108_v1 = vld [vmem:[#allocation7 + $0xa0] sm:$0xff]  ;;  %v4298_v3 = vpack.c.bf16 %v127_v60, %v124_v59 }
  0x59   :  { %v111_v2 = vld [vmem:[#allocation7 + $0xb8] sm:$0xff]  ;;  %v4301_v5 = vpack.c.bf16 %v134_v62, %v131_v61  ;;  %v130_v6 = vld [vmem:[#allocation7 + $0x150] sm:$0xff]  ;;  %v133_v7 = vld [vmem:[#allocation7 + $0x168] sm:$0xff] }
  0x5a   :  { %3348 = vmatpush1.bf16.msra.mxu0 %v4262_v38  ;;  %2960 = vmatmul.mubr.msk.f32.vlgmr.msra.gmra.mrb[2].mxu1 %vm155_vm0, %v138_v33  ;;  %v4304_v10 = vpack.c.bf16 %v111_v2, %v108_v1  ;;  %v114_v11 = vld [vmem:[#allocation7 + $0xd0] sm:$0xff]  ;;  %v117_v12 = vld [vmem:[#allocation7 + $0xe8] sm:$0xff]  ;;  %v4308_v13 = vpack.c.bf16 %v133_v7, %v130_v6  ;;  %v120_v17 = vld [vmem:[#allocation7 + $0x100] sm:$0xff] }
  0x5b   :  { %3350 = vmatprep.subr.bf16.mxu0 %v4265_v40  ;;  %3367 = vmatpush3.bf16.msra.mxu1 %v4271_v45  ;;  %v4312_v16 = vpack.c.bf16 %v117_v12, %v114_v11  ;;  %v123_v18 = vld [vmem:[#allocation7 + $0x118] sm:$0xff]  ;;  %v126_v20 = vld [vmem:[#allocation7 + $0x130] sm:$0xff]  ;;  %v129_v21 = vld [vmem:[#allocation7 + $0x148] sm:$0xff] }
  0x5c   :  { %2994 = vmatprep.mubr.msk.f32.mxu1 %vm4122_vm1, %v4120_v0  ;;  %3368 = vmatprep.subr.bf16.mxu1 %v4121_v35  ;;  %v4318_v19 = vpack.c.bf16 %v123_v18, %v120_v17  ;;  %v4326_v23 = vpack.c.bf16 %v129_v21, %v126_v20  ;;  %v132_v24 = vld [vmem:[#allocation7 + $0x160] sm:$0xff]  ;;  %v135_v26 = vld [vmem:[#allocation7 + $0x178] sm:$0xff]  ;;  %v136_v42 = vld [vmem:[%s4762_s3] sm:$0x7]  ;;  %v150_v17 = vsub.s32 2, %v141_v37 }
  0x5d   :  { %v4332_v29 = vpack.c.bf16 %v135_v26, %v132_v24  ;;  %v479_v30 = vld [vmem:[#allocation2 + $0x8] sm:$0xff]  ;;  %v4380_v44 = vrot.slane %v136_v42, %v142_v41  ;;  %v137_v46 = vld [vmem:[%s4763_s4] sm:$0x7]  ;;  %v4385_v47 = vrot.slane %v136_v42, %v146_v43 }
  0x5e   :  { %3352 = vmatpush1.bf16.msra.mxu0 %v4275_v48  ;;  %v4388_v51 = vrot.slane %v137_v46, %v142_v41  ;;  %v4391_v53 = vrot.slane %v137_v46, %v146_v43  ;;  %v4395_v18 = vrot.slane %v137_v46, %v150_v17  ;;  %v4397_v21 = vrot.slane %v136_v42, %v150_v17 }
  0x5f   :  { %3354 = vmatprep.subr.bf16.mxu0 %v4278_v49  ;;  %3370 = vmatpush3.bf16.msra.mxu1 %v4282_v54 }
  0x60   :  { %3371 = vmatprep.subr.bf16.mxu1 %v4121_v35 }
  0x62   :  { %3356 = vmatpush1.bf16.msra.mxu0 %v4288_v57 }
  0x63   :  { %3358 = vmatprep.subr.bf16.mxu0 %v4291_v58  ;;  %3373 = vmatpush3.bf16.msra.mxu1 %v4294_v63 }
  0x64   :  { %3374 = vmatprep.subr.bf16.mxu1 %v4121_v35 }
  0x66   :  { %3360 = vmatpush1.bf16.msra.mxu0 %v4298_v3 }
  0x67   :  { %3362 = vmatprep.subr.bf16.mxu0 %v4301_v5  ;;  %3376 = vmatpush3.bf16.msra.mxu1 %v4304_v10 }
  0x68   :  { %3377 = vmatprep.subr.bf16.mxu1 %v4121_v35 }
  0x6a   :  { %3364 = vmatpush1.bf16.msra.mxu0 %v4308_v13 }
  0x6b   :  { %3397 = vmatprep.subr.bf16.mxu0 %v4233_v4  ;;  %3379 = vmatpush3.bf16.msra.mxu1 %v4312_v16 }
  0x6c   :  { %3380 = vmatprep.subr.bf16.mxu1 %v4121_v35 }
  0x6d   :  { %381 = vmatmul.mubr.f32.vlgmr.msra.gmra.mrb[0].mxu0 %v4120_v0 }
  0x6e   :  { %3399 = vmatpush1.bf16.msra.mxu0 %v4235_v8  ;;  %688 = vmatprep.mubr.f32.mxu0 %v4120_v0 }
  0x6f   :  { %3401 = vmatprep.subr.bf16.mxu0 %v4237_v9  ;;  %3382 = vmatpush3.bf16.msra.mxu1 %v4318_v19 }
  0x70   :  { %3383 = vmatprep.subr.bf16.mxu1 %v4121_v35 }
  0x72   :  { %3403 = vmatpush1.bf16.msra.mxu0 %v4241_v14 }
  0x73   :  { %3405 = vmatprep.subr.bf16.mxu0 %v4244_v15  ;;  %3385 = vmatpush3.bf16.msra.mxu1 %v4326_v23 }
  0x74   :  { %3386 = vmatprep.subr.bf16.mxu1 %v4121_v35 }
  0x76   :  { %3407 = vmatpush1.bf16.msra.mxu0 %v4249_v25 }
  0x77   :  { %3409 = vmatprep.subr.bf16.mxu0 %v4254_v28  ;;  %3388 = vmatpush3.bf16.msra.mxu1 %v4332_v29 }
  0x78   :  { %3390 = vmatprep.subr.bf16.mxu1 %v4246_v22 }
  0x7a   :  { %3411 = vmatpush1.bf16.msra.mxu0 %v4262_v38  ;;  %2995 = vmatmul.mubr.f32.vlgmr.msra.gmra.mrb[4].mxu1 %v4120_v0 }
  0x7b   :  { %3413 = vmatprep.subr.bf16.mxu0 %v4265_v40  ;;  %3392 = vmatpush1.bf16.msra.mxu1 %v4251_v27 }
  0x7c   :  { %547 = vmatprep.mubr.f32.mxu1 %v4120_v0  ;;  %3393 = vmatprep.subr.bf16.mxu1 %v4121_v35 }
  0x7e   :  { %3415 = vmatpush1.bf16.msra.mxu0 %v4275_v48  ;;  %2749 = vmatmul.mubr.msk.f32.vlgmr.msra.gmra.mrb[6].mxu1 %vm155_vm0, %v479_v30 }
  0x7f   :  { %3417 = vmatprep.subr.bf16.mxu0 %v4278_v49  ;;  %3395 = vmatpush3.bf16.msra.mxu1 %v4259_v36 }
  0x80   :  { %3001 = vmatprep.mubr.msk.f32.mxu1 %vm4122_vm1, %v4120_v0  ;;  %3428 = vmatprep.subr.bf16.mxu1 %v4121_v35 }
  0x82   :  { %3419 = vmatpush1.bf16.msra.mxu0 %v4288_v57  ;;  %3002 = vmatmul.mubr.msk.f32.vlgmr.msra.gmra.mrb[8].mxu1 %vm155_vm0, %v479_v30 }
  0x83   :  { %3421 = vmatprep.subr.bf16.mxu0 %v4291_v58  ;;  %3430 = vmatpush3.bf16.msra.mxu1 %v4271_v45 }
  0x84   :  { %3036 = vmatprep.mubr.msk.f32.mxu1 %vm4122_vm1, %v4120_v0  ;;  %3431 = vmatprep.subr.bf16.mxu1 %v4121_v35 }
  0x86   :  { %3423 = vmatpush1.bf16.msra.mxu0 %v4298_v3 }
  0x87   :  { %3425 = vmatprep.subr.bf16.mxu0 %v4301_v5  ;;  %3433 = vmatpush3.bf16.msra.mxu1 %v4282_v54 }
  0x88   :  { %3434 = vmatprep.subr.bf16.mxu1 %v4121_v35 }
  0x8a   :  { %3427 = vmatpush1.bf16.msra.mxu0 %v4308_v13 }
  0x8b   :  { %3460 = vmatprep.subr.bf16.mxu0 %v4233_v4  ;;  %3436 = vmatpush3.bf16.msra.mxu1 %v4294_v63 }
  0x8c   :  { %3437 = vmatprep.subr.bf16.mxu1 %v4121_v35 }
  0x8f   :  { %3439 = vmatpush3.bf16.msra.mxu1 %v4304_v10 }
  0x90   :  { %3440 = vmatprep.subr.bf16.mxu1 %v4121_v35 }
  0x93   :  { %3442 = vmatpush3.bf16.msra.mxu1 %v4312_v16 }
  0x94   :  { %3443 = vmatprep.subr.bf16.mxu1 %v4121_v35 }
  0x97   :  { %3445 = vmatpush3.bf16.msra.mxu1 %v4318_v19 }
  0x98   :  { %3446 = vmatprep.subr.bf16.mxu1 %v4121_v35 }
  0x9b   :  { %3448 = vmatpush3.bf16.msra.mxu1 %v4326_v23 }
  0x9c   :  { %3449 = vmatprep.subr.bf16.mxu1 %v4121_v35 }
  0x9f   :  { %3451 = vmatpush3.bf16.msra.mxu1 %v4332_v29 }
  0xa0   :  { %3453 = vmatprep.subr.bf16.mxu1 %v4246_v22 }
 0x129   :  { %v225_v31 = vpop.f32.mrb[0].mxu1 }
 0x12a   :  { %v227_v33 = vpop.f32.mrb[1].mxu1  ;;  %v226_v50 = vadd.f32 %v225_v31, %v4380_v44 }
 0x12b   :  { %v228_v52 = vadd.f32 %v227_v33, %v4385_v47 }
 0x12c   :  { %v3855_v55 = vadd.f32 %v4388_v51, %v226_v50 }
 0x12d   :  { %v296_v34 = vpop.f32.mrb[2].mxu1  ;;  %v3858_v59 = vadd.f32 %v4391_v53, %v228_v52 }
 0x12e   :  { %v2961_v39 = vpop.f32.mrb[3].mxu1  ;;  %v297_v31 = vadd.f32 %v296_v34, %v4397_v21 }
 0x140   :  { %v382_v56 = vpop.f32.mrb[0].mxu0 }
 0x141   :  { %v3856_v60 = vadd.f32 %v3855_v55, %v382_v56  ;;  %v384_v61 = vpop.f32.mrb[1].mxu0  ;;  %v787_v56 = vld [vmem:[#allocation2 + $0x10] sm:$0xff] }
 0x142   :  { %v3859_v62 = vadd.f32 %v3858_v59, %v384_v61  ;;  %v4451_v59 = vadd.f32 %v4388_v51, %v4380_v44 }
 0x143   :  { %v2747_v1 = vmul.f32 -1.442695, %v3856_v60  ;;  %v4455_v60 = vadd.f32 %v4391_v53, %v4385_v47 }
 0x144   :  { %v2748_v2 = vmul.f32 -1.442695, %v3859_v62 }
 0x145   :  { %3914 = vpow2.f32 %v2747_v1 }
 0x146   :  { %3916 = vpow2.f32 %v2748_v2 }
 0x14d   :  { %v453_v6 = vpop.f32.mrb[4].mxu1 }
 0x14e   :  { %v2996_v11 = vpop.f32.mrb[5].mxu1  ;;  %v454_v26 = vadd.f32 %v453_v6, %v4395_v18 }
 0x14f   :  { %v3915_v7 = vpop.eup %3914 }
 0x150   :  { %v461_v12 = vadd.f32 1.0, %v3915_v7  ;;  %v3917_v20 = vpop.eup %3916 }
 0x151   :  { %v468_v24 = vadd.f32 1.0, %v3917_v20  ;;  %v549_v34 = vpop.f32.mrb[6].mxu1 }
 0x152   :  { %3918 = vrcp.f32 %v461_v12  ;;  %v551_v42 = vpop.f32.mrb[7].mxu1  ;;  %v3861_v61 = vadd.f32 %v4451_v59, %v549_v34 }
 0x153   :  { %3920 = vrcp.f32 %v468_v24  ;;  %v3864_v62 = vadd.f32 %v4455_v60, %v551_v42 }
 0x155   :  { %v620_v52 = vpop.f32.mrb[8].mxu1 }
 0x156   :  { %v3003_v55 = vpop.f32.mrb[9].mxu1 }
 0x157   :  { %v1095_v55 = vld [vmem:[#allocation2 + $0x18] sm:$0xff] }
 0x15c   :  { %v3919_v30 = vpop.eup %3918 }
 0x15d   :  { %v471_v32 = vmul.f32 %v3919_v30, %v454_v26  ;;  %v3921_v39 = vpop.eup %3920  ;;  %v621_v30 = vadd.f32 %v620_v52, %v4397_v21 }
 0x15e   :  { %v474_v41 = vsub.f32 1.0, %v3921_v39  ;;  %v476_v37 = vmul.f32 0.0, %v3921_v39 }
 0x15f   :  { %v472_v33 = vadd.f32 %v471_v32, %v297_v31 }
 0x161   :  { %3922 = vtanh.f32 %v472_v33 }
 0x16b   :  { %v3923_v43 = vpop.eup %3922 }
 0x16c   :  { %v475_v50 = vmul.f32 %v3923_v43, %v474_v41 }
 0x16e   :  { %v4401_v46 = vadd.f32 %v476_v37, %v475_v50 }
 0x170   :  { %689 = vmatmul.mubr.f32.vlgmr.msra.gmra.mrb[2].mxu0 %v4401_v46  ;;  %3037 = vmatmul.mubr.f32.vlgmr.msra.gmra.mrb[10].mxu1 %v4401_v46 }
 0x171   :  { %3455 = vmatpush1.bf16.msra.mxu1 %v4251_v27  ;;  %855 = vmatprep.mubr.f32.mxu1 %v4120_v0 }
 0x172   :  { %3456 = vmatprep.subr.bf16.mxu1 %v4121_v35  ;;  %3462 = vmatpush1.bf16.msra.mxu0 %v4235_v8 }
 0x173   :  { %3464 = vmatprep.subr.bf16.mxu0 %v4237_v9  ;;  %996 = vmatprep.mubr.f32.mxu0 %v4120_v0 }
 0x174   :  { %2753 = vmatmul.mubr.msk.f32.vlgmr.msra.gmra.mrb[12].mxu1 %vm155_vm0, %v787_v56 }
 0x175   :  { %3458 = vmatpush3.bf16.msra.mxu1 %v4259_v36  ;;  %3043 = vmatprep.mubr.msk.f32.mxu1 %vm4122_vm1, %v4120_v0 }
 0x176   :  { %3466 = vmatpush1.bf16.msra.mxu0 %v4241_v14  ;;  %3491 = vmatprep.subr.bf16.mxu1 %v4121_v35 }
 0x177   :  { %3468 = vmatprep.subr.bf16.mxu0 %v4244_v15 }
 0x178   :  { %3044 = vmatmul.mubr.msk.f32.vlgmr.msra.gmra.mrb[14].mxu1 %vm155_vm0, %v787_v56 }
 0x179   :  { %3493 = vmatpush3.bf16.msra.mxu1 %v4271_v45  ;;  %3078 = vmatprep.mubr.msk.f32.mxu1 %vm4122_vm1, %v4120_v0 }
 0x17a   :  { %3470 = vmatpush1.bf16.msra.mxu0 %v4249_v25  ;;  %3494 = vmatprep.subr.bf16.mxu1 %v4121_v35 }
 0x17b   :  { %3472 = vmatprep.subr.bf16.mxu0 %v4254_v28 }
 0x17d   :  { %3496 = vmatpush3.bf16.msra.mxu1 %v4282_v54 }
 0x17e   :  { %3474 = vmatpush1.bf16.msra.mxu0 %v4262_v38  ;;  %3497 = vmatprep.subr.bf16.mxu1 %v4121_v35 }
 0x17f   :  { %3476 = vmatprep.subr.bf16.mxu0 %v4265_v40 }
 0x181   :  { %3499 = vmatpush3.bf16.msra.mxu1 %v4294_v63 }
 0x182   :  { %3478 = vmatpush1.bf16.msra.mxu0 %v4275_v48  ;;  %3500 = vmatprep.subr.bf16.mxu1 %v4121_v35 }
 0x183   :  { %3480 = vmatprep.subr.bf16.mxu0 %v4278_v49 }
 0x185   :  { %3502 = vmatpush3.bf16.msra.mxu1 %v4304_v10 }
 0x186   :  { %3482 = vmatpush1.bf16.msra.mxu0 %v4288_v57  ;;  %3503 = vmatprep.subr.bf16.mxu1 %v4121_v35 }
 0x187   :  { %3484 = vmatprep.subr.bf16.mxu0 %v4291_v58 }
 0x189   :  { %3505 = vmatpush3.bf16.msra.mxu1 %v4312_v16 }
 0x18a   :  { %3486 = vmatpush1.bf16.msra.mxu0 %v4298_v3  ;;  %3506 = vmatprep.subr.bf16.mxu1 %v4121_v35 }
 0x18b   :  { %3488 = vmatprep.subr.bf16.mxu0 %v4301_v5 }
 0x18d   :  { %3508 = vmatpush3.bf16.msra.mxu1 %v4318_v19 }
 0x18e   :  { %3490 = vmatpush1.bf16.msra.mxu0 %v4308_v13  ;;  %3509 = vmatprep.subr.bf16.mxu1 %v4121_v35 }
 0x18f   :  { %3523 = vmatprep.subr.bf16.mxu0 %v4233_v4 }
 0x191   :  { %3511 = vmatpush3.bf16.msra.mxu1 %v4326_v23 }
 0x192   :  { %3512 = vmatprep.subr.bf16.mxu1 %v4121_v35 }
 0x195   :  { %3514 = vmatpush3.bf16.msra.mxu1 %v4332_v29 }
 0x196   :  { %3516 = vmatprep.subr.bf16.mxu1 %v4246_v22 }
 0x243   :  { %v690_v1 = vpop.f32.mrb[2].mxu0  ;;  %v761_v2 = vpop.f32.mrb[10].mxu1 }
 0x244   :  { %v3862_v6 = vadd.f32 %v3861_v61, %v690_v1  ;;  %v692_v7 = vpop.f32.mrb[3].mxu0  ;;  %v3038_v11 = vpop.f32.mrb[11].mxu1  ;;  %v762_v53 = vadd.f32 %v761_v2, %v4395_v18 }
 0x245   :  { %v3865_v12 = vadd.f32 %v3864_v62, %v692_v7 }
 0x246   :  { %v2751_v17 = vmul.f32 -1.442695, %v3862_v6 }
 0x247   :  { %v2752_v20 = vmul.f32 -1.442695, %v3865_v12 }
 0x248   :  { %3924 = vpow2.f32 %v2751_v17 }
 0x249   :  { %3926 = vpow2.f32 %v2752_v20 }
 0x252   :  { %v3925_v44 = vpop.eup %3924 }
 0x253   :  { %v769_v51 = vadd.f32 1.0, %v3925_v44  ;;  %v3927_v24 = vpop.eup %3926 }
 0x254   :  { %v776_v47 = vadd.f32 1.0, %v3927_v24 }
 0x255   :  { %3928 = vrcp.f32 %v769_v51 }
 0x256   :  { %3930 = vrcp.f32 %v776_v47 }
 0x25f   :  { %v3929_v26 = vpop.eup %3928 }
 0x260   :  { %v779_v31 = vmul.f32 %v3929_v26, %v762_v53  ;;  %v3931_v33 = vpop.eup %3930 }
 0x261   :  { %v782_v39 = vsub.f32 1.0, %v3931_v33  ;;  %v784_v50 = vmul.f32 %v3931_v33, %v4401_v46  ;;  %v857_v46 = vpop.f32.mrb[12].mxu1 }
 0x262   :  { %v780_v32 = vadd.f32 %v779_v31, %v621_v30  ;;  %v859_v34 = vpop.f32.mrb[13].mxu1  ;;  %v3867_v56 = vadd.f32 %v4451_v59, %v857_v46 }
 0x263   :  { %v928_v42 = vpop.f32.mrb[14].mxu1  ;;  %v3870_v61 = vadd.f32 %v4455_v60, %v859_v34 }
 0x264   :  { %3932 = vtanh.f32 %v780_v32  ;;  %v3045_v52 = vpop.f32.mrb[15].mxu1  ;;  %v929_v26 = vadd.f32 %v928_v42, %v4397_v21 }
 0x265   :  { %v1403_v52 = vld [vmem:[#allocation2 + $0x20] sm:$0xff] }
 0x26e   :  { %v3933_v41 = vpop.eup %3932 }
 0x26f   :  { %v783_v43 = vmul.f32 %v3933_v41, %v782_v39 }
 0x271   :  { %v4462_v37 = vadd.f32 %v784_v50, %v783_v43 }
 0x273   :  { %997 = vmatmul.mubr.f32.vlgmr.msra.gmra.mrb[4].mxu0 %v4462_v37  ;;  %3079 = vmatmul.mubr.f32.vlgmr.msra.gmra.mrb[16].mxu1 %v4462_v37 }
 0x274   :  { %3518 = vmatpush1.bf16.msra.mxu1 %v4251_v27  ;;  %1163 = vmatprep.mubr.f32.mxu1 %v4120_v0 }
 0x275   :  { %3519 = vmatprep.subr.bf16.mxu1 %v4121_v35  ;;  %3525 = vmatpush1.bf16.msra.mxu0 %v4235_v8 }
 0x276   :  { %3527 = vmatprep.subr.bf16.mxu0 %v4237_v9  ;;  %1304 = vmatprep.mubr.f32.mxu0 %v4120_v0 }
 0x277   :  { %2757 = vmatmul.mubr.msk.f32.vlgmr.msra.gmra.mrb[18].mxu1 %vm155_vm0, %v1095_v55 }
 0x278   :  { %3521 = vmatpush3.bf16.msra.mxu1 %v4259_v36  ;;  %3085 = vmatprep.mubr.msk.f32.mxu1 %vm4122_vm1, %v4120_v0 }
 0x279   :  { %3529 = vmatpush1.bf16.msra.mxu0 %v4241_v14  ;;  %3554 = vmatprep.subr.bf16.mxu1 %v4121_v35 }
 0x27a   :  { %3531 = vmatprep.subr.bf16.mxu0 %v4244_v15 }
 0x27b   :  { %3086 = vmatmul.mubr.msk.f32.vlgmr.msra.gmra.mrb[20].mxu1 %vm155_vm0, %v1095_v55 }
 0x27c   :  { %3556 = vmatpush3.bf16.msra.mxu1 %v4271_v45  ;;  %3120 = vmatprep.mubr.msk.f32.mxu1 %vm4122_vm1, %v4120_v0 }
 0x27d   :  { %3533 = vmatpush1.bf16.msra.mxu0 %v4249_v25  ;;  %3557 = vmatprep.subr.bf16.mxu1 %v4121_v35 }
 0x27e   :  { %3535 = vmatprep.subr.bf16.mxu0 %v4254_v28 }
 0x280   :  { %3559 = vmatpush3.bf16.msra.mxu1 %v4282_v54 }
 0x281   :  { %3537 = vmatpush1.bf16.msra.mxu0 %v4262_v38  ;;  %3560 = vmatprep.subr.bf16.mxu1 %v4121_v35 }
 0x282   :  { %3539 = vmatprep.subr.bf16.mxu0 %v4265_v40 }
 0x284   :  { %3562 = vmatpush3.bf16.msra.mxu1 %v4294_v63 }
 0x285   :  { %3541 = vmatpush1.bf16.msra.mxu0 %v4275_v48  ;;  %3563 = vmatprep.subr.bf16.mxu1 %v4121_v35 }
 0x286   :  { %3543 = vmatprep.subr.bf16.mxu0 %v4278_v49 }
 0x288   :  { %3565 = vmatpush3.bf16.msra.mxu1 %v4304_v10 }
 0x289   :  { %3545 = vmatpush1.bf16.msra.mxu0 %v4288_v57  ;;  %3566 = vmatprep.subr.bf16.mxu1 %v4121_v35 }
 0x28a   :  { %3547 = vmatprep.subr.bf16.mxu0 %v4291_v58 }
 0x28c   :  { %3568 = vmatpush3.bf16.msra.mxu1 %v4312_v16 }
 0x28d   :  { %3549 = vmatpush1.bf16.msra.mxu0 %v4298_v3  ;;  %3569 = vmatprep.subr.bf16.mxu1 %v4121_v35 }
 0x28e   :  { %3551 = vmatprep.subr.bf16.mxu0 %v4301_v5 }
 0x290   :  { %3571 = vmatpush3.bf16.msra.mxu1 %v4318_v19 }
 0x291   :  { %3553 = vmatpush1.bf16.msra.mxu0 %v4308_v13  ;;  %3572 = vmatprep.subr.bf16.mxu1 %v4121_v35 }
 0x292   :  { %3579 = vmatprep.subr.bf16.mxu0 %v4246_v22 }
 0x294   :  { %3574 = vmatpush3.bf16.msra.mxu1 %v4326_v23 }
 0x295   :  { %3575 = vmatprep.subr.bf16.mxu1 %v4121_v35 }
 0x298   :  { %3577 = vmatpush3.bf16.msra.mxu1 %v4332_v29 }
 0x299   :  { %3582 = vmatprep.subr.bf16.mxu1 %v4121_v35 }
 0x346   :  { %v998_v62 = vpop.f32.mrb[4].mxu0  ;;  %v1069_v1 = vpop.f32.mrb[16].mxu1 }
 0x347   :  { %v3868_v2 = vadd.f32 %v3867_v56, %v998_v62  ;;  %v1000_v6 = vpop.f32.mrb[5].mxu0  ;;  %v3080_v7 = vpop.f32.mrb[17].mxu1  ;;  %v1070_v47 = vadd.f32 %v1069_v1, %v4395_v18 }
 0x348   :  { %v3871_v11 = vadd.f32 %v3870_v61, %v1000_v6 }
 0x349   :  { %v2755_v12 = vmul.f32 -1.442695, %v3868_v2 }
 0x34a   :  { %v2756_v17 = vmul.f32 -1.442695, %v3871_v11 }
 0x34b   :  { %3934 = vpow2.f32 %v2755_v12 }
 0x34c   :  { %3936 = vpow2.f32 %v2756_v17 }
 0x355   :  { %v3935_v20 = vpop.eup %3934 }
 0x356   :  { %v1077_v44 = vadd.f32 1.0, %v3935_v20  ;;  %v3937_v51 = vpop.eup %3936 }
 0x357   :  { %v1084_v24 = vadd.f32 1.0, %v3937_v51 }
 0x358   :  { %3938 = vrcp.f32 %v1077_v44 }
 0x359   :  { %3940 = vrcp.f32 %v1084_v24 }
 0x362   :  { %v3939_v53 = vpop.eup %3938 }
 0x363   :  { %v1087_v30 = vmul.f32 %v3939_v53, %v1070_v47  ;;  %v3941_v32 = vpop.eup %3940 }
 0x364   :  { %v1090_v33 = vsub.f32 1.0, %v3941_v32  ;;  %v1092_v43 = vmul.f32 %v3941_v32, %v4462_v37  ;;  %v1165_v37 = vpop.f32.mrb[18].mxu1 }
 0x365   :  { %v1088_v31 = vadd.f32 %v1087_v30, %v929_v26  ;;  %v1167_v46 = vpop.f32.mrb[19].mxu1  ;;  %v3873_v55 = vadd.f32 %v4451_v59, %v1165_v37 }
 0x366   :  { %v1236_v34 = vpop.f32.mrb[20].mxu1  ;;  %v3876_v56 = vadd.f32 %v4455_v60, %v1167_v46  ;;  %v1711_v46 = vld [vmem:[#allocation2 + $0x28] sm:$0xff] }
 0x367   :  { %3942 = vtanh.f32 %v1088_v31  ;;  %v3087_v42 = vpop.f32.mrb[21].mxu1  ;;  %v1237_v53 = vadd.f32 %v1236_v34, %v4397_v21 }
 0x371   :  { %v3943_v39 = vpop.eup %3942 }
 0x372   :  { %v1091_v41 = vmul.f32 %v3943_v39, %v1090_v33 }
 0x374   :  { %v4515_v50 = vadd.f32 %v1092_v43, %v1091_v41 }
 0x376   :  { %1305 = vmatmul.mubr.f32.vlgmr.msra.gmra.mrb[6].mxu0 %v4515_v50  ;;  %3121 = vmatmul.mubr.f32.vlgmr.msra.gmra.mrb[22].mxu1 %v4515_v50 }
 0x377   :  { %3581 = vmatpush1.bf16.msra.mxu0 %v4251_v27  ;;  %3584 = vmatpush3.bf16.msra.mxu1 %v4259_v36 }
 0x378   :  { %1471 = vmatprep.mubr.f32.mxu0 %v4120_v0  ;;  %3127 = vmatprep.mubr.msk.f32.mxu1 %vm4122_vm1, %v4120_v0 }
 0x379   :  { %3586 = vmatprep.subr.bf16.mxu0 %v4233_v4  ;;  %3617 = vmatprep.subr.bf16.mxu1 %v4121_v35 }
 0x37a   :  { %2761 = vmatmul.mubr.msk.f32.vlgmr.msra.gmra.mrb[8].mxu0 %vm155_vm0, %v1403_v52  ;;  %3128 = vmatmul.mubr.msk.f32.vlgmr.msra.gmra.mrb[24].mxu1 %vm155_vm0, %v1403_v52 }
 0x37b   :  { %3588 = vmatpush1.bf16.msra.mxu0 %v4235_v8  ;;  %3619 = vmatpush3.bf16.msra.mxu1 %v4271_v45 }
 0x37c   :  { %3590 = vmatprep.subr.bf16.mxu0 %v4237_v9  ;;  %3620 = vmatprep.subr.bf16.mxu1 %v4121_v35 }
 0x37d   :  { %1612 = vmatprep.mubr.f32.mxu0 %v4120_v0  ;;  %3162 = vmatprep.mubr.msk.f32.mxu1 %vm4122_vm1, %v4120_v0 }
 0x37f   :  { %3592 = vmatpush1.bf16.msra.mxu0 %v4241_v14  ;;  %3622 = vmatpush3.bf16.msra.mxu1 %v4282_v54 }
 0x380   :  { %3594 = vmatprep.subr.bf16.mxu0 %v4244_v15  ;;  %3623 = vmatprep.subr.bf16.mxu1 %v4121_v35 }
 0x383   :  { %3596 = vmatpush1.bf16.msra.mxu0 %v4249_v25  ;;  %3625 = vmatpush3.bf16.msra.mxu1 %v4294_v63 }
 0x384   :  { %3598 = vmatprep.subr.bf16.mxu0 %v4254_v28  ;;  %3626 = vmatprep.subr.bf16.mxu1 %v4121_v35 }
 0x387   :  { %3600 = vmatpush1.bf16.msra.mxu0 %v4262_v38  ;;  %3628 = vmatpush3.bf16.msra.mxu1 %v4304_v10 }
 0x388   :  { %3602 = vmatprep.subr.bf16.mxu0 %v4265_v40  ;;  %3629 = vmatprep.subr.bf16.mxu1 %v4121_v35 }
 0x38b   :  { %3604 = vmatpush1.bf16.msra.mxu0 %v4275_v48  ;;  %3631 = vmatpush3.bf16.msra.mxu1 %v4312_v16 }
 0x38c   :  { %3606 = vmatprep.subr.bf16.mxu0 %v4278_v49  ;;  %3632 = vmatprep.subr.bf16.mxu1 %v4121_v35 }
 0x38f   :  { %3608 = vmatpush1.bf16.msra.mxu0 %v4288_v57  ;;  %3634 = vmatpush3.bf16.msra.mxu1 %v4318_v19 }
 0x390   :  { %3610 = vmatprep.subr.bf16.mxu0 %v4291_v58  ;;  %3635 = vmatprep.subr.bf16.mxu1 %v4121_v35 }
 0x393   :  { %3612 = vmatpush1.bf16.msra.mxu0 %v4298_v3  ;;  %3637 = vmatpush3.bf16.msra.mxu1 %v4326_v23 }
 0x394   :  { %3614 = vmatprep.subr.bf16.mxu0 %v4301_v5  ;;  %3638 = vmatprep.subr.bf16.mxu1 %v4121_v35 }
 0x397   :  { %3616 = vmatpush1.bf16.msra.mxu0 %v4308_v13  ;;  %3640 = vmatpush3.bf16.msra.mxu1 %v4332_v29 }
 0x398   :  { %3642 = vmatprep.subr.bf16.mxu0 %v4246_v22  ;;  %3645 = vmatprep.subr.bf16.mxu1 %v4121_v35 }
 0x449   :  { %v1306_v61 = vpop.f32.mrb[6].mxu0  ;;  %v1377_v62 = vpop.f32.mrb[22].mxu1 }
 0x44a   :  { %v3874_v1 = vadd.f32 %v3873_v55, %v1306_v61  ;;  %v1308_v2 = vpop.f32.mrb[7].mxu0  ;;  %v3122_v6 = vpop.f32.mrb[23].mxu1  ;;  %v1378_v24 = vadd.f32 %v1377_v62, %v4395_v18 }
 0x44b   :  { %v3877_v7 = vadd.f32 %v3876_v56, %v1308_v2 }
 0x44c   :  { %v2759_v11 = vmul.f32 -1.442695, %v3874_v1 }
 0x44d   :  { %v2760_v12 = vmul.f32 -1.442695, %v3877_v7 }
 0x44e   :  { %3944 = vpow2.f32 %v2759_v11 }
 0x44f   :  { %3946 = vpow2.f32 %v2760_v12 }
 0x458   :  { %v3945_v17 = vpop.eup %3944 }
 0x459   :  { %v1385_v20 = vadd.f32 1.0, %v3945_v17  ;;  %v3947_v44 = vpop.eup %3946 }
 0x45a   :  { %v1392_v51 = vadd.f32 1.0, %v3947_v44 }
 0x45b   :  { %3948 = vrcp.f32 %v1385_v20 }
 0x45c   :  { %3950 = vrcp.f32 %v1392_v51 }
 0x465   :  { %v3949_v47 = vpop.eup %3948 }
 0x466   :  { %v1395_v26 = vmul.f32 %v3949_v47, %v1378_v24  ;;  %v3951_v31 = vpop.eup %3950 }
 0x467   :  { %v1398_v32 = vsub.f32 1.0, %v3951_v31  ;;  %v1400_v41 = vmul.f32 %v3951_v31, %v4515_v50  ;;  %v1544_v50 = vpop.f32.mrb[24].mxu1 }
 0x468   :  { %v1396_v30 = vadd.f32 %v1395_v26, %v1237_v53  ;;  %v3129_v37 = vpop.f32.mrb[25].mxu1  ;;  %v1545_v20 = vadd.f32 %v1544_v50, %v4397_v21 }
 0x46a   :  { %3952 = vtanh.f32 %v1396_v30 }
 0x474   :  { %v3953_v33 = vpop.eup %3952 }
 0x475   :  { %v1399_v39 = vmul.f32 %v3953_v33, %v1398_v32 }
 0x477   :  { %v4568_v43 = vadd.f32 %v1400_v41, %v1399_v39  ;;  %v2019_v39 = vld [vmem:[#allocation2 + $0x30] sm:$0xff] }
 0x479   :  { %1613 = vmatmul.mubr.f32.vlgmr.msra.gmra.mrb[8].mxu0 %v4568_v43  ;;  %3163 = vmatmul.mubr.f32.vlgmr.msra.gmra.mrb[26].mxu1 %v4568_v43 }
 0x47a   :  { %3644 = vmatpush1.bf16.msra.mxu0 %v4251_v27  ;;  %3647 = vmatpush3.bf16.msra.mxu1 %v4259_v36 }
 0x47b   :  { %1779 = vmatprep.mubr.f32.mxu0 %v4120_v0  ;;  %3169 = vmatprep.mubr.msk.f32.mxu1 %vm4122_vm1, %v4120_v0 }
 0x47c   :  { %3649 = vmatprep.subr.bf16.mxu0 %v4233_v4  ;;  %3680 = vmatprep.subr.bf16.mxu1 %v4121_v35 }
 0x47d   :  { %2765 = vmatmul.mubr.msk.f32.vlgmr.msra.gmra.mrb[10].mxu0 %vm155_vm0, %v1711_v46  ;;  %3170 = vmatmul.mubr.msk.f32.vlgmr.msra.gmra.mrb[28].mxu1 %vm155_vm0, %v1711_v46 }
 0x47e   :  { %3651 = vmatpush1.bf16.msra.mxu0 %v4235_v8  ;;  %3682 = vmatpush3.bf16.msra.mxu1 %v4271_v45 }
 0x47f   :  { %3653 = vmatprep.subr.bf16.mxu0 %v4237_v9  ;;  %3683 = vmatprep.subr.bf16.mxu1 %v4121_v35 }
 0x480   :  { %1920 = vmatprep.mubr.f32.mxu0 %v4120_v0  ;;  %3204 = vmatprep.mubr.msk.f32.mxu1 %vm4122_vm1, %v4120_v0 }
 0x482   :  { %3655 = vmatpush1.bf16.msra.mxu0 %v4241_v14  ;;  %3685 = vmatpush3.bf16.msra.mxu1 %v4282_v54 }
 0x483   :  { %3657 = vmatprep.subr.bf16.mxu0 %v4244_v15  ;;  %3686 = vmatprep.subr.bf16.mxu1 %v4121_v35 }
 0x486   :  { %3659 = vmatpush1.bf16.msra.mxu0 %v4249_v25  ;;  %3688 = vmatpush3.bf16.msra.mxu1 %v4294_v63 }
 0x487   :  { %3661 = vmatprep.subr.bf16.mxu0 %v4254_v28  ;;  %3689 = vmatprep.subr.bf16.mxu1 %v4121_v35 }
 0x48a   :  { %3663 = vmatpush1.bf16.msra.mxu0 %v4262_v38  ;;  %3691 = vmatpush3.bf16.msra.mxu1 %v4304_v10 }
 0x48b   :  { %3665 = vmatprep.subr.bf16.mxu0 %v4265_v40  ;;  %3692 = vmatprep.subr.bf16.mxu1 %v4121_v35 }
 0x48e   :  { %3667 = vmatpush1.bf16.msra.mxu0 %v4275_v48  ;;  %3694 = vmatpush3.bf16.msra.mxu1 %v4312_v16 }
 0x48f   :  { %3669 = vmatprep.subr.bf16.mxu0 %v4278_v49  ;;  %3695 = vmatprep.subr.bf16.mxu1 %v4121_v35 }
 0x492   :  { %3671 = vmatpush1.bf16.msra.mxu0 %v4288_v57  ;;  %3697 = vmatpush3.bf16.msra.mxu1 %v4318_v19 }
 0x493   :  { %3673 = vmatprep.subr.bf16.mxu0 %v4291_v58  ;;  %3698 = vmatprep.subr.bf16.mxu1 %v4121_v35 }
 0x496   :  { %3675 = vmatpush1.bf16.msra.mxu0 %v4298_v3  ;;  %3700 = vmatpush3.bf16.msra.mxu1 %v4326_v23 }
 0x497   :  { %3677 = vmatprep.subr.bf16.mxu0 %v4301_v5  ;;  %3701 = vmatprep.subr.bf16.mxu1 %v4121_v35 }
 0x49a   :  { %3679 = vmatpush1.bf16.msra.mxu0 %v4308_v13  ;;  %3703 = vmatpush3.bf16.msra.mxu1 %v4332_v29 }
 0x49b   :  { %3705 = vmatprep.subr.bf16.mxu0 %v4246_v22  ;;  %3708 = vmatprep.subr.bf16.mxu1 %v4121_v35 }
 0x54c   :  { %v1614_v34 = vpop.f32.mrb[8].mxu0  ;;  %v1685_v42 = vpop.f32.mrb[26].mxu1 }
 0x54d   :  { %v3879_v52 = vadd.f32 %v4451_v59, %v1614_v34  ;;  %v1616_v55 = vpop.f32.mrb[9].mxu0  ;;  %v3164_v56 = vpop.f32.mrb[27].mxu1  ;;  %v1686_v12 = vadd.f32 %v1685_v42, %v4395_v18 }
 0x54e   :  { %v3881_v62 = vadd.f32 %v4455_v60, %v1616_v55 }
 0x54f   :  { %v2763_v61 = vmul.f32 -1.442695, %v3879_v52 }
 0x550   :  { %v2764_v1 = vmul.f32 -1.442695, %v3881_v62  ;;  %v1852_v32 = vpop.f32.mrb[28].mxu1 }
 0x551   :  { %3954 = vpow2.f32 %v2763_v61  ;;  %v3171_v33 = vpop.f32.mrb[29].mxu1 }
 0x552   :  { %3956 = vpow2.f32 %v2764_v1 }
 0x55b   :  { %v3955_v2 = vpop.eup %3954 }
 0x55c   :  { %v1693_v6 = vadd.f32 1.0, %v3955_v2  ;;  %v3957_v7 = vpop.eup %3956  ;;  %v1853_v2 = vadd.f32 %v1852_v32, %v4397_v21  ;;  %v2637_v32 = vld [vmem:[#allocation8 + $0x18] sm:$0xff] }
 0x55d   :  { %v1700_v11 = vadd.f32 1.0, %v3957_v7 }
 0x55e   :  { %3958 = vrcp.f32 %v1693_v6 }
 0x55f   :  { %3960 = vrcp.f32 %v1700_v11 }
 0x568   :  { %v3959_v17 = vpop.eup %3958 }
 0x569   :  { %v1703_v44 = vmul.f32 %v3959_v17, %v1686_v12  ;;  %v3961_v24 = vpop.eup %3960 }
 0x56a   :  { %v1706_v47 = vsub.f32 1.0, %v3961_v24  ;;  %v1708_v30 = vmul.f32 %v3961_v24, %v4568_v43 }
 0x56b   :  { %v1704_v51 = vadd.f32 %v1703_v44, %v1545_v20 }
 0x56d   :  { %3962 = vtanh.f32 %v1704_v51 }
 0x577   :  { %v3963_v53 = vpop.eup %3962 }
 0x578   :  { %v1707_v26 = vmul.f32 %v3963_v53, %v1706_v47  ;;  %v2327_v53 = vld [vmem:[#allocation2 + $0x38] sm:$0xff] }
 0x57a   :  { %v4621_v31 = vadd.f32 %v1708_v30, %v1707_v26  ;;  %v2635_v26 = vld [vmem:[#allocation8 + $0x8] sm:$0xff] }
 0x57c   :  { %1921 = vmatmul.mubr.f32.vlgmr.msra.gmra.mrb[10].mxu0 %v4621_v31  ;;  %3205 = vmatmul.mubr.f32.vlgmr.msra.gmra.mrb[30].mxu1 %v4621_v31 }
 0x57d   :  { %3707 = vmatpush1.bf16.msra.mxu0 %v4251_v27  ;;  %3710 = vmatpush3.bf16.msra.mxu1 %v4259_v36 }
 0x57e   :  { %2087 = vmatprep.mubr.f32.mxu0 %v4120_v0  ;;  %3211 = vmatprep.mubr.msk.f32.mxu1 %vm4122_vm1, %v4120_v0 }
 0x57f   :  { %3712 = vmatprep.subr.bf16.mxu0 %v4233_v4  ;;  %3743 = vmatprep.subr.bf16.mxu1 %v4121_v35 }
 0x580   :  { %2769 = vmatmul.mubr.msk.f32.vlgmr.msra.gmra.mrb[12].mxu0 %vm155_vm0, %v2019_v39  ;;  %3212 = vmatmul.mubr.msk.f32.vlgmr.msra.gmra.mrb[32].mxu1 %vm155_vm0, %v2019_v39  ;;  %v2638_v39 = vld [vmem:[#allocation8 + $0x20] sm:$0xff] }
 0x581   :  { %3714 = vmatpush1.bf16.msra.mxu0 %v4235_v8  ;;  %3745 = vmatpush3.bf16.msra.mxu1 %v4271_v45 }
 0x582   :  { %3716 = vmatprep.subr.bf16.mxu0 %v4237_v9  ;;  %3746 = vmatprep.subr.bf16.mxu1 %v4121_v35 }
 0x583   :  { %2228 = vmatprep.mubr.f32.mxu0 %v4120_v0  ;;  %3246 = vmatprep.mubr.msk.f32.mxu1 %vm4122_vm1, %v4120_v0 }
 0x585   :  { %3718 = vmatpush1.bf16.msra.mxu0 %v4241_v14  ;;  %3748 = vmatpush3.bf16.msra.mxu1 %v4282_v54 }
 0x586   :  { %3720 = vmatprep.subr.bf16.mxu0 %v4244_v15  ;;  %3749 = vmatprep.subr.bf16.mxu1 %v4121_v35 }
 0x589   :  { %3722 = vmatpush1.bf16.msra.mxu0 %v4249_v25  ;;  %3751 = vmatpush3.bf16.msra.mxu1 %v4294_v63 }
 0x58a   :  { %3724 = vmatprep.subr.bf16.mxu0 %v4254_v28  ;;  %3752 = vmatprep.subr.bf16.mxu1 %v4121_v35 }
 0x58d   :  { %3726 = vmatpush1.bf16.msra.mxu0 %v4262_v38  ;;  %3754 = vmatpush3.bf16.msra.mxu1 %v4304_v10 }
 0x58e   :  { %3728 = vmatprep.subr.bf16.mxu0 %v4265_v40  ;;  %3755 = vmatprep.subr.bf16.mxu1 %v4121_v35 }
 0x591   :  { %3730 = vmatpush1.bf16.msra.mxu0 %v4275_v48  ;;  %3757 = vmatpush3.bf16.msra.mxu1 %v4312_v16 }
 0x592   :  { %3732 = vmatprep.subr.bf16.mxu0 %v4278_v49  ;;  %3758 = vmatprep.subr.bf16.mxu1 %v4121_v35 }
 0x595   :  { %3734 = vmatpush1.bf16.msra.mxu0 %v4288_v57  ;;  %3760 = vmatpush3.bf16.msra.mxu1 %v4318_v19 }
 0x596   :  { %3736 = vmatprep.subr.bf16.mxu0 %v4291_v58  ;;  %3761 = vmatprep.subr.bf16.mxu1 %v4121_v35 }
 0x599   :  { %3738 = vmatpush1.bf16.msra.mxu0 %v4298_v3  ;;  %3763 = vmatpush3.bf16.msra.mxu1 %v4326_v23 }
 0x59a   :  { %3740 = vmatprep.subr.bf16.mxu0 %v4301_v5  ;;  %3764 = vmatprep.subr.bf16.mxu1 %v4121_v35 }
 0x59d   :  { %3742 = vmatpush1.bf16.msra.mxu0 %v4308_v13  ;;  %3766 = vmatpush3.bf16.msra.mxu1 %v4332_v29 }
 0x59e   :  { %3768 = vmatprep.subr.bf16.mxu0 %v4246_v22  ;;  %3771 = vmatprep.subr.bf16.mxu1 %v4121_v35 }
 0x64f   :  { %v1922_v41 = vpop.f32.mrb[10].mxu0  ;;  %v1993_v43 = vpop.f32.mrb[30].mxu1 }
 0x650   :  { %v3883_v50 = vadd.f32 %v4451_v59, %v1922_v41  ;;  %v1924_v37 = vpop.f32.mrb[11].mxu0  ;;  %v3206_v46 = vpop.f32.mrb[31].mxu1  ;;  %v1994_v22 = vadd.f32 %v1993_v43, %v4395_v18  ;;  %v2639_v41 = vld [vmem:[#allocation8 + $0x28] sm:$0xff] }
 0x651   :  { %v3885_v42 = vadd.f32 %v4455_v60, %v1924_v37  ;;  %v3837_v43 = vpack.c.bf16 %v2639_v41, %v2638_v39  ;;  %v2642_v46 = vld [vmem:[#allocation8 + $0x40] sm:$0xff] }
 0x652   :  { %v2767_v34 = vmul.f32 -1.442695, %v3883_v50  ;;  %v2641_v50 = vld [vmem:[#allocation8 + $0x38] sm:$0xff] }
 0x653   :  { %v2768_v52 = vmul.f32 -1.442695, %v3885_v42  ;;  %v2160_v24 = vpop.f32.mrb[32].mxu1 }
 0x654   :  { %3964 = vpow2.f32 %v2767_v34  ;;  %v3213_v47 = vpop.f32.mrb[33].mxu1  ;;  %v2643_v34 = vld [vmem:[#allocation8 + $0x48] sm:$0xff] }
 0x655   :  { %3966 = vpow2.f32 %v2768_v52  ;;  %v3843_v42 = vpack.c.bf16 %v2643_v34, %v2642_v46  ;;  %v2644_v52 = vld [vmem:[#allocation8 + $0x50] sm:$0xff] }
 0x65e   :  { %v3965_v55 = vpop.eup %3964 }
 0x65f   :  { %v2001_v56 = vadd.f32 1.0, %v3965_v55  ;;  %v3967_v61 = vpop.eup %3966  ;;  %v2645_v55 = vld [vmem:[#allocation8 + $0x58] sm:$0xff] }
 0x660   :  { %v2008_v62 = vadd.f32 1.0, %v3967_v61  ;;  %v2646_v61 = vld [vmem:[#allocation8 + $0x60] sm:$0xff] }
 0x661   :  { %3968 = vrcp.f32 %v2001_v56  ;;  %v3846_v56 = vpack.c.bf16 %v2645_v55, %v2644_v52 }
 0x662   :  { %3970 = vrcp.f32 %v2008_v62  ;;  %v2647_v62 = vld [vmem:[#allocation8 + $0x68] sm:$0xff] }
 0x66b   :  { %v3969_v1 = vpop.eup %3968 }
 0x66c   :  { %v2011_v6 = vmul.f32 %v3969_v1, %v1994_v22  ;;  %v3971_v11 = vpop.eup %3970  ;;  %v3849_v22 = vpack.c.bf16 %v2647_v62, %v2646_v61  ;;  %v2648_v1 = vld [vmem:[#allocation8 + $0x70] sm:$0xff] }
 0x66d   :  { %v2014_v12 = vsub.f32 1.0, %v3971_v11  ;;  %v2016_v44 = vmul.f32 %v3971_v11, %v4621_v31  ;;  %v2636_v31 = vld [vmem:[#allocation8 + $0x10] sm:$0xff] }
 0x66e   :  { %v2012_v7 = vadd.f32 %v2011_v6, %v1853_v2  ;;  %v3834_v33 = vpack.c.bf16 %v2637_v32, %v2636_v31  ;;  %v2649_v2 = vld [vmem:[#allocation8 + $0x78] sm:$0xff] }
 0x66f   :  { %v3852_v6 = vpack.c.bf16 %v2649_v2, %v2648_v1 }
 0x670   :  { %3972 = vtanh.f32 %v2012_v7 }
 0x67a   :  { %v3973_v17 = vpop.eup %3972 }
 0x67b   :  { %v2015_v20 = vmul.f32 %v3973_v17, %v2014_v12 }
 0x67d   :  { %v4674_v51 = vadd.f32 %v2016_v44, %v2015_v20 }
 0x67f   :  { %2229 = vmatmul.mubr.f32.vlgmr.msra.gmra.mrb[12].mxu0 %v4674_v51  ;;  %3247 = vmatmul.mubr.f32.vlgmr.msra.gmra.mrb[34].mxu1 %v4674_v51 }
 0x680   :  { %3770 = vmatpush1.bf16.msra.mxu0 %v4251_v27  ;;  %3773 = vmatpush3.bf16.msra.mxu1 %v4259_v36 }
 0x681   :  { %2395 = vmatprep.mubr.f32.mxu0 %v4120_v0  ;;  %3253 = vmatprep.mubr.msk.f32.mxu1 %vm4122_vm1, %v4120_v0 }
 0x682   :  { %3775 = vmatprep.subr.bf16.mxu0 %v4233_v4  ;;  %3806 = vmatprep.subr.bf16.mxu1 %v4121_v35 }
 0x683   :  { %2773 = vmatmul.mubr.msk.f32.vlgmr.msra.gmra.mrb[14].mxu0 %vm155_vm0, %v2327_v53  ;;  %3254 = vmatmul.mubr.msk.f32.vlgmr.msra.gmra.mrb[36].mxu1 %vm155_vm0, %v2327_v53 }
 0x684   :  { %3777 = vmatpush1.bf16.msra.mxu0 %v4235_v8  ;;  %3808 = vmatpush3.bf16.msra.mxu1 %v4271_v45 }
 0x685   :  { %3779 = vmatprep.subr.bf16.mxu0 %v4237_v9  ;;  %3809 = vmatprep.subr.bf16.mxu1 %v4121_v35 }
 0x686   :  { %2536 = vmatprep.mubr.f32.mxu0 %v4120_v0  ;;  %3288 = vmatprep.mubr.msk.f32.mxu1 %vm4122_vm1, %v4120_v0 }
 0x688   :  { %3781 = vmatpush1.bf16.msra.mxu0 %v4241_v14  ;;  %3811 = vmatpush3.bf16.msra.mxu1 %v4282_v54  ;;  %v2161_v54 = vadd.f32 %v2160_v24, %v4397_v21 }
 0x689   :  { %3783 = vmatprep.subr.bf16.mxu0 %v4244_v15  ;;  %3812 = vmatprep.subr.bf16.mxu1 %v4121_v35 }
 0x68c   :  { %3785 = vmatpush1.bf16.msra.mxu0 %v4249_v25  ;;  %3814 = vmatpush3.bf16.msra.mxu1 %v4294_v63 }
 0x68d   :  { %3787 = vmatprep.subr.bf16.mxu0 %v4254_v28  ;;  %3815 = vmatprep.subr.bf16.mxu1 %v4121_v35 }
 0x690   :  { %3789 = vmatpush1.bf16.msra.mxu0 %v4262_v38  ;;  %3817 = vmatpush3.bf16.msra.mxu1 %v4304_v10 }
 0x691   :  { %3791 = vmatprep.subr.bf16.mxu0 %v4265_v40  ;;  %3818 = vmatprep.subr.bf16.mxu1 %v4121_v35 }
 0x694   :  { %3793 = vmatpush1.bf16.msra.mxu0 %v4275_v48  ;;  %3820 = vmatpush3.bf16.msra.mxu1 %v4312_v16 }
 0x695   :  { %3795 = vmatprep.subr.bf16.mxu0 %v4278_v49  ;;  %3821 = vmatprep.subr.bf16.mxu1 %v4121_v35 }
 0x698   :  { %3797 = vmatpush1.bf16.msra.mxu0 %v4288_v57  ;;  %3823 = vmatpush3.bf16.msra.mxu1 %v4318_v19 }
 0x699   :  { %3799 = vmatprep.subr.bf16.mxu0 %v4291_v58  ;;  %3824 = vmatprep.subr.bf16.mxu1 %v4121_v35 }
 0x69c   :  { %3801 = vmatpush1.bf16.msra.mxu0 %v4298_v3  ;;  %3826 = vmatpush3.bf16.msra.mxu1 %v4326_v23 }
 0x69d   :  { %3803 = vmatprep.subr.bf16.mxu0 %v4301_v5  ;;  %3827 = vmatprep.subr.bf16.mxu1 %v4121_v35 }
 0x6a0   :  { %3805 = vmatpush1.bf16.msra.mxu0 %v4308_v13  ;;  %3829 = vmatpush3.bf16.msra.mxu1 %v4332_v29  ;;  %v2634_v29 = vld [vmem:[#allocation8] sm:$0xff] }
 0x6a1   :  { %3830 = vmatprep.subr.bf16.mxu0 %v4121_v35  ;;  %v3831_v30 = vpack.c.bf16 %v2635_v26, %v2634_v29 }
 0x752   :  { %v2230_v4 = vpop.f32.mrb[12].mxu0  ;;  %v2301_v8 = vpop.f32.mrb[34].mxu1 }
 0x753   :  { %v3887_v9 = vadd.f32 %v4451_v59, %v2230_v4  ;;  %v2232_v14 = vpop.f32.mrb[13].mxu0  ;;  %v3248_v15 = vpop.f32.mrb[35].mxu1  ;;  %v2302_v48 = vadd.f32 %v2301_v8, %v4395_v18 }
 0x754   :  { %v3889_v27 = vadd.f32 %v4455_v60, %v2232_v14 }
 0x755   :  { %v2771_v25 = vmul.f32 -1.442695, %v3887_v9 }
 0x756   :  { %v2772_v28 = vmul.f32 -1.442695, %v3889_v27  ;;  %v2468_v19 = vpop.f32.mrb[36].mxu1 }
 0x757   :  { %3974 = vpow2.f32 %v2771_v25  ;;  %v3255_v23 = vpop.f32.mrb[37].mxu1  ;;  %v2469_v14 = vadd.f32 %v2468_v19, %v4397_v21 }
 0x758   :  { %3976 = vpow2.f32 %v2772_v28 }
 0x761   :  { %v3975_v36 = vpop.eup %3974 }
 0x762   :  { %v2309_v38 = vadd.f32 1.0, %v3975_v36  ;;  %v3977_v40 = vpop.eup %3976 }
 0x763   :  { %v2316_v45 = vadd.f32 1.0, %v3977_v40  ;;  %v2777_v40 = vld [vmem:[%s4765_s6] ss:$0 sm:$0xff] }
 0x764   :  { %3978 = vrcp.f32 %v2309_v38 }
 0x765   :  { %3980 = vrcp.f32 %v2316_v45 }
 0x76e   :  { %v3979_v49 = vpop.eup %3978 }
 0x76f   :  { %v2319_v57 = vmul.f32 %v3979_v49, %v2302_v48  ;;  %v3981_v63 = vpop.eup %3980 }
 0x770   :  { %v2322_v3 = vsub.f32 1.0, %v3981_v63  ;;  %v2324_v13 = vmul.f32 %v3981_v63, %v4674_v51 }
 0x771   :  { %v2320_v58 = vadd.f32 %v2319_v57, %v2161_v54 }
 0x773   :  { %3982 = vtanh.f32 %v2320_v58 }
 0x77d   :  { %v3983_v5 = vpop.eup %3982 }
 0x77e   :  { %v2323_v10 = vmul.f32 %v3983_v5, %v2322_v3 }
 0x780   :  { %v4726_v16 = vadd.f32 %v2324_v13, %v2323_v10 }
 0x782   :  { %2537 = vmatmul.mubr.f32.vlgmr.msra.gmra.mrb[14].mxu0 %v4726_v16  ;;  %3289 = vmatmul.mubr.f32.vlgmr.msra.gmra.mrb[38].mxu1 %v4726_v16 }
 0x783   :  { %3323 = vmatprep.mubr.msk.f32.mxu0 %vm4122_vm1, %v4120_v0  ;;  %3832 = vmatpush3.bf16.msra.mxu0 %v3831_v30  ;;  %v2640_v0 = vld [vmem:[#allocation8 + $0x30] sm:$0xff] }
 0x784   :  { %3833 = vmatprep.subr.bf16.mxu0 %v4121_v35  ;;  %v3840_v37 = vpack.c.bf16 %v2641_v50, %v2640_v0 }
 0x787   :  { %3835 = vmatpush3.bf16.msra.mxu0 %v3834_v33 }
 0x788   :  { %3836 = vmatprep.subr.bf16.mxu0 %v4121_v35 }
 0x78b   :  { %3838 = vmatpush3.bf16.msra.mxu0 %v3837_v43 }
 0x78c   :  { %3839 = vmatprep.subr.bf16.mxu0 %v4121_v35 }
 0x78f   :  { %3841 = vmatpush3.bf16.msra.mxu0 %v3840_v37 }
 0x790   :  { %3842 = vmatprep.subr.bf16.mxu0 %v4121_v35 }
 0x793   :  { %3844 = vmatpush3.bf16.msra.mxu0 %v3843_v42 }
 0x794   :  { %3845 = vmatprep.subr.bf16.mxu0 %v4121_v35 }
 0x797   :  { %3847 = vmatpush3.bf16.msra.mxu0 %v3846_v56 }
 0x798   :  { %3848 = vmatprep.subr.bf16.mxu0 %v4121_v35 }
 0x79b   :  { %3850 = vmatpush3.bf16.msra.mxu0 %v3849_v22 }
 0x79c   :  { %3851 = vmatprep.subr.bf16.mxu0 %v4121_v35 }
 0x79f   :  { %3853 = vmatpush3.bf16.msra.mxu0 %v3852_v6 }
 0x855   :  { %v2538_v7 = vpop.f32.mrb[14].mxu0  ;;  %v2609_v11 = vpop.f32.mrb[38].mxu1 }
 0x856   :  { %v3891_v12 = vadd.f32 %v4451_v59, %v2538_v7  ;;  %v2540_v17 = vpop.f32.mrb[15].mxu0  ;;  %v3290_v20 = vpop.f32.mrb[39].mxu1  ;;  %v2610_v35 = vadd.f32 %v2609_v11, %v4395_v18 }
 0x857   :  { %v3893_v51 = vadd.f32 %v4455_v60, %v2540_v17 }
 0x858   :  { %v2775_v44 = vmul.f32 -1.442695, %v3891_v12 }
 0x859   :  { %v2776_v24 = vmul.f32 -1.442695, %v3893_v51 }
 0x85a   :  { %3984 = vpow2.f32 %v2775_v44 }
 0x85b   :  { %3986 = vpow2.f32 %v2776_v24 }
 0x864   :  { %v3985_v47 = vpop.eup %3984 }
 0x865   :  { %v2617_v53 = vadd.f32 1.0, %v3985_v47  ;;  %v3987_v4 = vpop.eup %3986 }
 0x866   :  { %v2624_v8 = vadd.f32 1.0, %v3987_v4 }
 0x867   :  { %3988 = vrcp.f32 %v2617_v53 }
 0x868   :  { %3990 = vrcp.f32 %v2624_v8 }
 0x871   :  { %v3989_v9 = vpop.eup %3988 }
 0x872   :  { %v2627_v15 = vmul.f32 %v3989_v9, %v2610_v35  ;;  %v3991_v25 = vpop.eup %3990 }
 0x873   :  { %v2630_v27 = vsub.f32 1.0, %v3991_v25  ;;  %v2632_v36 = vmul.f32 %v3991_v25, %v4726_v16 }
 0x874   :  { %v2628_v59 = vadd.f32 %v2627_v15, %v2469_v14 }
 0x876   :  { %3992 = vtanh.f32 %v2628_v59 }
 0x880   :  { %v3993_v60 = vpop.eup %3992 }
 0x881   :  { %v2631_v28 = vmul.f32 %v3993_v60, %v2630_v27 }
 0x883   :  { %v2633_v38 = vadd.f32 %v2632_v36, %v2631_v28 }
 0x885   :  { %3324 = vmatmul.mubr.f32.vlgmr.msra.gmra.mrb[16].mxu0 %v2633_v38 }
 0x958   :  { %v2723_v18 = vpop.f32.mrb[16].mxu0 }
 0x959   :  { %v2724_v21 = vadd.f32 %v2777_v40, %v2723_v18  ;;  %v3325_v45 = vpop.f32.mrb[17].mxu0 }
 0x95b   :  { %2727 = vst [vmem:[#allocation10] sm:$0xff] %v2724_v21 }
 0x95c   :  { %4093 = shalt.err (!%p4090_p8)
}
 0x95d   :  { %s4094_s13 = scalar_lea.hbm %s4766_s7, 128 }
 0x95e   :  { %p4095_p9 = scmp.ne.s32.totalorder %s4766_s7, %s4094_s13  ;;  %p4098_p10 = scmp.lt.u32.totalorder %s4094_s13, %s4766_s7 }
 0x960   :  { %p4100_p11 = pnand %p4098_p10, %p4095_p9 }
 0x962   :  { %4103 = shalt.err (!%p4100_p11)
}
 0x963   :  { %2737 = dma.vmem_to_hbm [thread:$0]  %s2735_s30, 128, %s4766_s7, [#allocation4]  }
 0x964   :  { %4110 = dma.done.wait [#allocation4], 128  }
 0x965   :  { %4111 = vsyncadd [#allocation4], 4294967168 }
 0x966   :  { %2741 = vsyncpa [#allocation3], 1 }
 0x967   :  { %2742 = vsyncpa [#allocation6], 1 }
 0x968   :  { %2743 = vsyncpa [#allocation9], 1 }
 0x969   :  { %2744 = vsyncpa [#allocation4], 1 }

</bundles_post_ra>
